<compile_context>
chip_gen: v5e
topology: v5e:2x2
jax: 0.10.0
libtpu: 0.0.40
codegen_flags: <defaults>
</compile_context>

<pallas_src>
import functools

import jax
import jax.numpy as jnp
import numpy as np
from jax.experimental import pallas as pl
from jax.experimental.pallas import tpu as pltpu

_LANE = 128
_SUBLANE = 8
_F32 = jnp.float32
_BF16 = jnp.bfloat16


def _round_up(x, m):
    return (x + m - 1) // m * m


# ----------------------------------------------------------------------------
# In-kernel building blocks
# ----------------------------------------------------------------------------
def _one_net_logits(mv, st, pos, clip_emb, hidden, out_dim, prefs):
    """Full hypernetwork forward for one batch tile -> (Bt, out_dim) f32 logits."""
    (W_emb_ref, b_emb_ref, W_tr_ref, b_tr_ref,
     W1f_ref, Bw1_ref, Wb1_ref, b_b1_ref,
     W2c_ref, bw2c_ref, Wb2_ref, b_b2_ref) = prefs

    # --- static embedding + hyper trunk (tiny K -> keep f32) ---
    e = jnp.dot(mv, W_emb_ref[...], preferred_element_type=_F32) + b_emb_ref[...]
    if clip_emb:
        # TODO(synk): original clip_emb impl unknown; assume clamp(-1, 1) before pos_emb.
        e = jnp.clip(e, -1.0, 1.0)
    if pos is not None:
        e = e + pos
    h = jnp.dot(e, W_tr_ref[...], preferred_element_type=_F32) + b_tr_ref[...]
    h = jnp.maximum(h, 0.0)                                   # (Bt, H) f32
    h_bf = h.astype(_BF16)                                    # single cast for all bf16 dots

    # --- dynamic layer 1 as ONE bf16 MXU dot -------------------------------
    #   out1_j = sum_{i,k} z_i h_k W1f[i*H+k, j] + (z @ Bw1)_j + (h @ Wb1)_j + b_b1_j
    z = jnp.concatenate([e, st], axis=1)                      # (Bt, I) f32
    in_dim = z.shape[1]
    zh = jnp.concatenate([z[:, i:i + 1] * h for i in range(in_dim)], axis=1)
    acc = jnp.dot(zh.astype(_BF16), W1f_ref[...], preferred_element_type=_F32)
    acc = acc + jnp.dot(h_bf, Wb1_ref[...], preferred_element_type=_F32)   # dynamic b1
    acc = acc + jnp.dot(z, Bw1_ref[...], preferred_element_type=_F32)      # sum_i z_i b_w1[i]
    acc = acc + b_b1_ref[...]
    x = jnp.maximum(acc, 0.0)                                 # (Bt, H) f32 (stays f32)

    # --- dynamic layer 2: one wide bf16 dot + per-column row reductions -----
    # t_all[:, o*H:(o+1)*H] = h @ w2[:, :, o] ;  out_o = sum_m x_m * t_all[:, o*H+m] + b2_o
    t_all = jnp.dot(h_bf, W2c_ref[...], preferred_element_type=_F32) + bw2c_ref[...]
    b2dyn = jnp.dot(h, Wb2_ref[...], preferred_element_type=_F32) + b_b2_ref[...]
    cols = [jnp.sum(x * t_all[:, o * hidden:(o + 1) * hidden], axis=1, keepdims=True)
            for o in range(out_dim)]
    return jnp.concatenate(cols, axis=1) + b2dyn              # (Bt, O) f32


def _cat_stats(logits):
    """Vectorized log-softmax + Categorical entropy over the last axis (f32)."""
    m = jnp.max(logits, axis=1, keepdims=True)
    ex = jnp.exp(logits - m)
    se = jnp.sum(ex, axis=1, keepdims=True)
    ls = logits - m - jnp.log(se)
    ent = -jnp.sum(ex * ls, axis=1, keepdims=True) / se
    return ls, ent


def _pad_lanes(vals, lanes):
    bt, c = vals.shape
    if c == lanes:
        return vals
    return jnp.concatenate([vals, jnp.zeros((bt, lanes - c), vals.dtype)], axis=1)


def _split_inputs(xin_ref, meta_v_dim, emb_dim, state_dim, has_pos):
    xin = xin_ref[...].astype(_F32)
    mv = xin[:, :meta_v_dim]
    st = xin[:, meta_v_dim:meta_v_dim + state_dim]
    pos = None
    if has_pos:
        pos = xin[:, meta_v_dim + state_dim:meta_v_dim + state_dim + emb_dim]
    return mv, st, pos


# ----------------------------------------------------------------------------
# Kernels
# ----------------------------------------------------------------------------
def _hyper_fwd_kernel(clip_emb, has_pos, meta_v_dim, emb_dim, state_dim, out_dim,
                      hidden, with_stats, *refs):
    xin_ref = refs[0]
    prefs = refs[1:13]
    out_ref = refs[13]
    stats_ref = refs[14] if with_stats else None

    mv, st, pos = _split_inputs(xin_ref, meta_v_dim, emb_dim, state_dim, has_pos)
    logits = _one_net_logits(mv, st, pos, clip_emb, hidden, out_dim, prefs)
    out_ref[...] = _pad_lanes(logits, out_ref.shape[1])
    if with_stats:
        ls, ent = _cat_stats(logits)
        stats_ref[...] = _pad_lanes(jnp.concatenate([ls, ent], axis=1),
                                    stats_ref.shape[1])


def _ac_evaluate_kernel(clip_emb, has_pos, meta_v_dim, emb_dim, state_dim, action_dim,
                        hidden, *refs):
    """Fused actor+critic evaluate: one slab = [log_softmax(A), entropy, value, 0...]."""
    xin_ref = refs[0]
    a_prefs = refs[1:13]
    c_prefs = refs[13:25]
    slab_ref = refs[25]

    mv, st, pos = _split_inputs(xin_ref, meta_v_dim, emb_dim, state_dim, has_pos)
    logits = _one_net_logits(mv, st, pos, clip_emb, hidden, action_dim, a_prefs)
    ls, ent = _cat_stats(logits)
    value = _one_net_logits(mv, st, pos, clip_emb, hidden, 1, c_prefs)
    slab_ref[...] = _pad_lanes(jnp.concatenate([ls, ent, value], axis=1),
                               slab_ref.shape[1])


# ----------------------------------------------------------------------------
# Parameter init (PyTorch-Linear-style uniform), pre-permuted to kernel layout
# ----------------------------------------------------------------------------
def _linear_init(key, fan_in, fan_out):
    kw, kb = jax.random.split(key)
    lim = 1.0 / np.sqrt(fan_in)
    W = jax.random.uniform(kw, (fan_in, fan_out), _F32, -lim, lim)
    b = jax.random.uniform(kb, (1, fan_out), _F32, -lim, lim)
    return W, b


def init_hyper_params(key, meta_v_dim, meta_v_emb_dim, state_dim, out_dim, hidden_dim,
                      head_dtype=_BF16):
    I, H, O = meta_v_emb_dim + state_dim, hidden_dim, out_dim
    ks = jax.random.split(key, 6)
    W_emb, b_emb = _linear_init(ks[0], meta_v_dim, meta_v_emb_dim)
    W_tr, b_tr = _linear_init(ks[1], meta_v_emb_dim, H)
    W_w1, b_w1 = _linear_init(ks[2], H, I * H)     # hyper head -> dynamic w1
    W_b1, b_b1 = _linear_init(ks[3], H, H)         # hyper head -> dynamic b1
    W_w2, b_w2 = _linear_init(ks[4], H, H * O)     # hyper head -> dynamic w2
    W_b2, b_b2 = _linear_init(ks[5], H, O)         # hyper head -> dynamic b2

    # One-time kernel layouts (pure JAX, outside the kernel):
    #   W1f[i*H + k, j] = W_w1[k, i*H + j]   -> layer 1 as ONE (Bt, I*H) @ (I*H, H) dot
    W1f = W_w1.reshape(H, I, H).transpose(1, 0, 2).reshape(I * H, H)
    Bw1 = b_w1.reshape(I, H)
    #   W2c[k, o*H + m] = W_w2[k, m*O + o]   -> layer 2 as ONE (Bt, H) @ (H, O*H) dot
    W2c = W_w2.reshape(H, H, O).transpose(0, 2, 1).reshape(H, O * H)
    bw2c = b_w2.reshape(H, O).T.reshape(1, O * H)

    # Only the big hyper-head matrices are stored bf16 (half the HBM/VMEM bytes,
    # bf16 x bf16 MXU dots); everything tiny stays f32 so there are no in-kernel upcasts.
    return {
        "W_emb": W_emb, "b_emb": b_emb, "W_tr": W_tr, "b_tr": b_tr,
        "W1f": W1f.astype(head_dtype), "Bw1": Bw1,
        "Wb1": W_b1.astype(head_dtype), "b_b1": b_b1,
        "W2c": W2c.astype(head_dtype), "bw2c": bw2c,
        "Wb2": W_b2, "b_b2": b_b2,
    }


_PARAM_ORDER = ("W_emb", "b_emb", "W_tr", "b_tr", "W1f", "Bw1", "Wb1", "b_b1",
                "W2c", "bw2c", "Wb2", "b_b2")


# ----------------------------------------------------------------------------
# Wrapper helpers (tiling / specs / limits)
# ----------------------------------------------------------------------------
def _pick_batch_tile(batch):
    # >= 2 grid steps whenever the batch allows it, so the "parallel" batch axis
    # shards across v7x's two TensorCores; capped at 256 so large batches amortize
    # the ~0.35us per-grid-step overhead on v5e/v6e without blowing up VMEM temps.
    half = _round_up(max((batch + 1) // 2, 1), _SUBLANE)
    return min(256, half)


def _vmem_limit_bytes():
    # Generation-aware: ~48 MiB on 128 MiB v5e/v6e, ~38 MiB on 64 MiB v7x.
    try:
        cap = int(getattr(pltpu.get_tpu_info(), "vmem_capacity_bytes", 128 * 1024 * 1024))
    except Exception:
        cap = 128 * 1024 * 1024
    return max(16 * 1024 * 1024, min(48 * 1024 * 1024, (cap * 3) // 5))


def _batch_spec(shape, bt):
    n = len(shape)
    return pl.BlockSpec((bt,) + tuple(shape[1:]), lambda b, n=n: (b,) + (0,) * (n - 1))


def _const_spec(x, single_buffer):
    n = x.ndim
    idx = lambda b, n=n: (0,) * n
    if single_buffer and hasattr(pl, "Buffered"):
        # Constant-index weights never re-DMA: a single buffer halves the resident
        # footprint (matters inside v7x's 64 MiB VMEM). Only relevant with >1 grid step.
        try:
            return pl.BlockSpec(x.shape, idx, pipeline_mode=pl.Buffered(1))
        except Exception:
            pass
    return pl.BlockSpec(x.shape, idx)


def _pack_inputs(meta_v, state, pos_emb):
    """Pack [meta_v, state (, pos_emb)] into ONE lane-dense batch block; pad the batch."""
    B = meta_v.shape[0]
    pieces = [meta_v.astype(_F32), state.astype(_F32)]
    has_pos = pos_emb is not None
    if has_pos:
        pieces.append(pos_emb.astype(_F32))
    xin = jnp.concatenate(pieces, axis=1)
    bt = _pick_batch_tile(B)
    bp = _round_up(B, bt)
    if bp != B:
        xin = jnp.pad(xin, ((0, bp - B), (0, 0)))
    return xin, bt, bp, has_pos


# ----------------------------------------------------------------------------
# Module wrappers
# ----------------------------------------------------------------------------
class HyperNetworkEmbedInputCH:
    def __init__(self, key, meta_v_dim, meta_v_emb_dim, state_dim, output_dim,
                 hidden_dim=256, clip_emb=False, head_dtype=_BF16):
        self.meta_v_dim = meta_v_dim
        self.meta_v_emb_dim = meta_v_emb_dim
        self.state_dim = state_dim
        self.output_dim = output_dim
        self.hidden_dim = hidden_dim
        self.clip_emb = clip_emb
        self.in_dim = meta_v_emb_dim + state_dim
        self.params = init_hyper_params(key, meta_v_dim, meta_v_emb_dim, state_dim,
                                        output_dim, hidden_dim, head_dtype)

    def param_list(self):
        return [self.params[k] for k in _PARAM_ORDER]

    def __call__(self, meta_v, state, pos_emb=None):
        return self.forward(meta_v, state, pos_emb=pos_emb)

    def forward(self, meta_v, state, pos_emb=None, with_stats=False):
        B = meta_v.shape[0]
        O = self.output_dim
        xin, bt, bp, has_pos = _pack_inputs(meta_v, state, pos_emb)
        params = self.param_list()
        multi_step = (bp // bt) > 1

        kernel = functools.partial(
            _hyper_fwd_kernel, self.clip_emb, has_pos, self.meta_v_dim,
            self.meta_v_emb_dim, self.state_dim, O, self.hidden_dim, with_stats)

        out_lanes = _round_up(max(O, 1), _LANE)
        out_shapes = [jax.ShapeDtypeStruct((bp, out_lanes), _F32)]
        out_specs = [pl.BlockSpec((bt, out_lanes), lambda b: (b, 0))]
        if with_stats:
            stat_lanes = _round_up(O + 1, _LANE)
            out_shapes.append(jax.ShapeDtypeStruct((bp, stat_lanes), _F32))
            out_specs.append(pl.BlockSpec((bt, stat_lanes), lambda b: (b, 0)))

        # TODO(synk): for very large hidden_dim * in_dim (W1f >> 8-16 MiB, e.g. H>=512),
        # add a second "arbitrary" grid axis that tiles the flattened I*H K dimension
        # with an f32 accumulator scratch so the head also fits v7x's 64 MiB VMEM.
        results = pl.pallas_call(
            kernel,
            out_shape=tuple(out_shapes),
            grid=(bp // bt,),
            in_specs=[_batch_spec(xin.shape, bt)]
                     + [_const_spec(p, multi_step) for p in params],
            out_specs=tuple(out_specs),
            compiler_params=pltpu.CompilerParams(
                dimension_semantics=("parallel",),
                vmem_limit_bytes=_vmem_limit_bytes()),
        )(xin, *params)

        if not with_stats:
            return results[0][:B, :O]
        logits = results[0][:B, :O]
        stats = results[1]
        return logits, stats[:B, :O], stats[:B, O]

    # Pure-JAX reference in the ORIGINAL module layout (weights reconstructed from the
    # stored kernel-layout parameters, so it sees the same bf16-rounded head weights).
    def reference(self, meta_v, state, pos_emb=None):
        B = meta_v.shape[0]
        H, O, I = self.hidden_dim, self.output_dim, self.in_dim
        p = self.params
        W_w1 = p["W1f"].astype(_F32).reshape(I, H, H).transpose(1, 0, 2).reshape(H, I * H)
        b_w1 = p["Bw1"].reshape(1, I * H)
        W_w2 = p["W2c"].astype(_F32).reshape(H, O, H).transpose(0, 2, 1).reshape(H, H * O)
        b_w2 = p["bw2c"].reshape(O, H).T.reshape(1, H * O)

        e = meta_v.astype(_F32) @ p["W_emb"] + p["b_emb"]
        if self.clip_emb:
            e = jnp.clip(e, -1.0, 1.0)
        if pos_emb is not None:
            e = e + pos_emb
        h = jax.nn.relu(e @ p["W_tr"] + p["b_tr"])
        w1 = (h @ W_w1 + b_w1).reshape(B, I, H)
        b1 = h @ p["Wb1"].astype(_F32) + p["b_b1"]
        w2 = (h @ W_w2 + b_w2).reshape(B, H, O)
        b2 = h @ p["Wb2"] + p["b_b2"]
        z = jnp.concatenate([e, state.astype(_F32)], axis=1)
        x = jax.nn.relu(jnp.einsum("bi,bij->bj", z, w1) + b1)
        return jnp.einsum("bi,bij->bj", x, w2) + b2


class HyperACEmbedInputCH:
    def __init__(self, key, meta_v_dim, meta_v_emb_dim, state_dim, action_dim,
                 hidden_dim=256, clip_emb=False, head_dtype=_BF16):
        ka, kc = jax.random.split(key)
        self.meta_v_dim = meta_v_dim
        self.meta_v_emb_dim = meta_v_emb_dim
        self.state_dim = state_dim
        self.action_dim = action_dim
        self.hidden_dim = hidden_dim
        self.clip_emb = clip_emb
        self.actor = HyperNetworkEmbedInputCH(ka, meta_v_dim, meta_v_emb_dim, state_dim,
                                              action_dim, hidden_dim, clip_emb, head_dtype)
        self.critic = HyperNetworkEmbedInputCH(kc, meta_v_dim, meta_v_emb_dim, state_dim,
                                               1, hidden_dim, clip_emb, head_dtype)

    def act(self, rng_key, meta_v, state, ret_prob=False, pos_emb=None):
        # TODO(synk): torch Categorical.sample() uses the global RNG; explicit jax key is glue.
        logits, log_probs, _ = self.actor.forward(meta_v, state, pos_emb=pos_emb,
                                                  with_stats=True)
        action = jax.random.categorical(rng_key, logits, axis=-1)
        action_logprob = jnp.take_along_axis(log_probs, action[:, None], axis=1)[:, 0]
        if ret_prob:
            return action, action_logprob, jnp.exp(log_probs)   # exp(log_softmax) == softmax
        return action, action_logprob

    def evaluate(self, meta_v, state, action, pos_emb=None):
        """Fused actor+critic forward: ONE pallas_call -> [log_softmax, entropy, value]."""
        B = meta_v.shape[0]
        A = self.action_dim
        xin, bt, bp, has_pos = _pack_inputs(meta_v, state, pos_emb)
        a_params = self.actor.param_list()
        c_params = self.critic.param_list()
        multi_step = (bp // bt) > 1

        kernel = functools.partial(
            _ac_evaluate_kernel, self.clip_emb, has_pos, self.meta_v_dim,
            self.meta_v_emb_dim, self.state_dim, A, self.hidden_dim)

        lanes = _round_up(A + 2, _LANE)
        slab = pl.pallas_call(
            kernel,
            out_shape=jax.ShapeDtypeStruct((bp, lanes), _F32),
            grid=(bp // bt,),
            in_specs=[_batch_spec(xin.shape, bt)]
                     + [_const_spec(p, multi_step) for p in a_params]
                     + [_const_spec(p, multi_step) for p in c_params],
            out_specs=pl.BlockSpec((bt, lanes), lambda b: (b, 0)),
            compiler_params=pltpu.CompilerParams(
                dimension_semantics=("parallel",),
                vmem_limit_bytes=_vmem_limit_bytes()),
        )(xin, *a_params, *c_params)

        log_probs = slab[:B, :A]
        entropy = slab[:B, A]
        values = slab[:B, A + 1:A + 2]
        action_logprobs = jnp.take_along_axis(log_probs, action[:, None], axis=1)[:, 0]
        return action_logprobs, values, entropy


# ----------------------------------------------------------------------------
if __name__ == "__main__":
    B = 2
    META_V_DIM = 6
    META_V_EMB_DIM = 8
    STATE_DIM = 16
    ACTION_DIM = 5
    HIDDEN_DIM = 32

    root = jax.random.PRNGKey(0)
    k_mod, k_mv, k_st, k_act, k_sample = jax.random.split(root, 5)

    model = HyperACEmbedInputCH(k_mod, META_V_DIM, META_V_EMB_DIM, STATE_DIM,
                                ACTION_DIM, hidden_dim=HIDDEN_DIM, clip_emb=True)

    meta_v = jax.random.normal(k_mv, (B, META_V_DIM), jnp.float32)
    state = jax.random.normal(k_st, (B, STATE_DIM), jnp.float32)
    action = jax.random.randint(k_act, (B,), 0, ACTION_DIM)

    # evaluate path: ONE fused actor+critic pallas_call.
    logp, values, entropy = model.evaluate(meta_v, state, action)
    jax.block_until_ready((logp, values, entropy))

    # act path: actor kernel (logits + fused log-softmax/entropy epilogue) + sampling glue.
    a, a_logp, probs = model.act(k_sample, meta_v, state, ret_prob=True)
    jax.block_until_ready((a, a_logp, probs))

    # Validate the fused Pallas forwards against the pure-JAX reference (same
    # bf16-rounded head weights; kernel feeds bf16 operands to the MXU, f32 accumulation).
    actor_logits = model.actor.forward(meta_v, state)
    actor_ref = model.actor.reference(meta_v, state)
    critic_val = model.critic.forward(meta_v, state)
    critic_ref = model.critic.reference(meta_v, state)
    jax.block_until_ready((actor_logits, critic_val))

    np.testing.assert_allclose(np.asarray(actor_logits), np.asarray(actor_ref),
                               rtol=5e-3, atol=5e-3)
    np.testing.assert_allclose(np.asarray(critic_val), np.asarray(critic_ref),
                               rtol=5e-3, atol=5e-3)
    np.testing.assert_allclose(np.asarray(values), np.asarray(critic_ref),
                               rtol=5e-3, atol=5e-3)

    # Validate the fused log-softmax / entropy / value slab from evaluate().
    ls_ref = jax.nn.log_softmax(actor_ref, axis=-1)
    logp_ref = jnp.take_along_axis(ls_ref, action[:, None], axis=1)[:, 0]
    ent_ref = -jnp.sum(jnp.exp(ls_ref) * ls_ref, axis=-1)
    np.testing.assert_allclose(np.asarray(logp), np.asarray(logp_ref),
                               rtol=5e-3, atol=5e-3)
    np.testing.assert_allclose(np.asarray(entropy), np.asarray(ent_ref),
                               rtol=5e-3, atol=5e-3)

    print("KERNEL_OK")
</pallas_src>

<mosaic_0001>
module attributes {stable_mosaic.version = 11 : i64} {
  func.func @_ac_evaluate_kernel(%arg0: i32, %arg1: memref<8x22xf32, #tpu.memory_space<vmem>>, %arg2: memref<6x8xf32, #tpu.memory_space<vmem>>, %arg3: memref<1x8xf32, #tpu.memory_space<vmem>>, %arg4: memref<8x32xf32, #tpu.memory_space<vmem>>, %arg5: memref<1x32xf32, #tpu.memory_space<vmem>>, %arg6: memref<768x32xbf16, #tpu.memory_space<vmem>>, %arg7: memref<24x32xf32, #tpu.memory_space<vmem>>, %arg8: memref<32x32xbf16, #tpu.memory_space<vmem>>, %arg9: memref<1x32xf32, #tpu.memory_space<vmem>>, %arg10: memref<32x160xbf16, #tpu.memory_space<vmem>>, %arg11: memref<1x160xf32, #tpu.memory_space<vmem>>, %arg12: memref<32x5xf32, #tpu.memory_space<vmem>>, %arg13: memref<1x5xf32, #tpu.memory_space<vmem>>, %arg14: memref<6x8xf32, #tpu.memory_space<vmem>>, %arg15: memref<1x8xf32, #tpu.memory_space<vmem>>, %arg16: memref<8x32xf32, #tpu.memory_space<vmem>>, %arg17: memref<1x32xf32, #tpu.memory_space<vmem>>, %arg18: memref<768x32xbf16, #tpu.memory_space<vmem>>, %arg19: memref<24x32xf32, #tpu.memory_space<vmem>>, %arg20: memref<32x32xbf16, #tpu.memory_space<vmem>>, %arg21: memref<1x32xf32, #tpu.memory_space<vmem>>, %arg22: memref<32x32xbf16, #tpu.memory_space<vmem>>, %arg23: memref<1x32xf32, #tpu.memory_space<vmem>>, %arg24: memref<32x1xf32, #tpu.memory_space<vmem>>, %arg25: memref<1x1xf32, #tpu.memory_space<vmem>>, %arg26: memref<8x128xf32, #tpu.memory_space<vmem>>) attributes {dimension_semantics = [#tpu.dimension_semantics<parallel>], iteration_bounds = array<i64: 1>, scalar_prefetch = 0 : i64, scratch_operands = 0 : i64, tpu.core_type = #tpu.core_type<tc>, window_params = [{transform_indices = @transform_0, window_bounds = array<i64: 8, 22>}, {pipeline_mode = #tpu.pipeline_mode<synchronous>, transform_indices = @transform_1, window_bounds = array<i64: 6, 8>}, {pipeline_mode = #tpu.pipeline_mode<synchronous>, transform_indices = @transform_2, window_bounds = array<i64: 1, 8>}, {pipeline_mode = #tpu.pipeline_mode<synchronous>, transform_indices = @transform_3, window_bounds = array<i64: 8, 32>}, {pipeline_mode = #tpu.pipeline_mode<synchronous>, transform_indices = @transform_4, window_bounds = array<i64: 1, 32>}, {pipeline_mode = #tpu.pipeline_mode<synchronous>, transform_indices = @transform_5, window_bounds = array<i64: 768, 32>}, {pipeline_mode = #tpu.pipeline_mode<synchronous>, transform_indices = @transform_6, window_bounds = array<i64: 24, 32>}, {pipeline_mode = #tpu.pipeline_mode<synchronous>, transform_indices = @transform_7, window_bounds = array<i64: 32, 32>}, {pipeline_mode = #tpu.pipeline_mode<synchronous>, transform_indices = @transform_8, window_bounds = array<i64: 1, 32>}, {pipeline_mode = #tpu.pipeline_mode<synchronous>, transform_indices = @transform_9, window_bounds = array<i64: 32, 160>}, {pipeline_mode = #tpu.pipeline_mode<synchronous>, transform_indices = @transform_10, window_bounds = array<i64: 1, 160>}, {pipeline_mode = #tpu.pipeline_mode<synchronous>, transform_indices = @transform_11, window_bounds = array<i64: 32, 5>}, {pipeline_mode = #tpu.pipeline_mode<synchronous>, transform_indices = @transform_12, window_bounds = array<i64: 1, 5>}, {pipeline_mode = #tpu.pipeline_mode<synchronous>, transform_indices = @transform_13, window_bounds = array<i64: 6, 8>}, {pipeline_mode = #tpu.pipeline_mode<synchronous>, transform_indices = @transform_14, window_bounds = array<i64: 1, 8>}, {pipeline_mode = #tpu.pipeline_mode<synchronous>, transform_indices = @transform_15, window_bounds = array<i64: 8, 32>}, {pipeline_mode = #tpu.pipeline_mode<synchronous>, transform_indices = @transform_16, window_bounds = array<i64: 1, 32>}, {pipeline_mode = #tpu.pipeline_mode<synchronous>, transform_indices = @transform_17, window_bounds = array<i64: 768, 32>}, {pipeline_mode = #tpu.pipeline_mode<synchronous>, transform_indices = @transform_18, window_bounds = array<i64: 24, 32>}, {pipeline_mode = #tpu.pipeline_mode<synchronous>, transform_indices = @transform_19, window_bounds = array<i64: 32, 32>}, {pipeline_mode = #tpu.pipeline_mode<synchronous>, transform_indices = @transform_20, window_bounds = array<i64: 1, 32>}, {pipeline_mode = #tpu.pipeline_mode<synchronous>, transform_indices = @transform_21, window_bounds = array<i64: 32, 32>}, {pipeline_mode = #tpu.pipeline_mode<synchronous>, transform_indices = @transform_22, window_bounds = array<i64: 1, 32>}, {pipeline_mode = #tpu.pipeline_mode<synchronous>, transform_indices = @transform_23, window_bounds = array<i64: 32, 1>}, {pipeline_mode = #tpu.pipeline_mode<synchronous>, transform_indices = @transform_24, window_bounds = array<i64: 1, 1>}, {transform_indices = @transform_25, window_bounds = array<i64: 8, 128>}]} {
    %c0 = arith.constant 0 : index
    %c0_0 = arith.constant 0 : index
    %0 = vector.load %arg1[%c0, %c0_0] : memref<8x22xf32, #tpu.memory_space<vmem>>, vector<8x22xf32>
    %1 = vector.extract_strided_slice %0 {offsets = [0, 0], sizes = [8, 6], strides = [1, 1]} : vector<8x22xf32> to vector<8x6xf32>
    %2 = vector.extract_strided_slice %0 {offsets = [0, 6], sizes = [8, 16], strides = [1, 1]} : vector<8x22xf32> to vector<8x16xf32>
    %c0_1 = arith.constant 0 : index
    %c0_2 = arith.constant 0 : index
    %3 = vector.load %arg2[%c0_1, %c0_2] : memref<6x8xf32, #tpu.memory_space<vmem>>, vector<6x8xf32>
    %cst = arith.constant dense<0.000000e+00> : vector<8x8xf32>
    %4 = tpu.matmul %1, %3, %cst {dimension_numbers = #tpu.dot_dimension_numbers<[1], [0], [0], [1], [0, 0, 1, 1], [], []>} : vector<8x6xf32>, vector<6x8xf32>, vector<8x8xf32> -> vector<8x8xf32>
    %c0_3 = arith.constant 0 : index
    %c0_4 = arith.constant 0 : index
    %5 = vector.load %arg3[%c0_3, %c0_4] : memref<1x8xf32, #tpu.memory_space<vmem>>, vector<1x8xf32>
    %6 = vector.broadcast %5 : vector<1x8xf32> to vector<8x8xf32>
    %7 = arith.addf %4, %6 : vector<8x8xf32>
    %cst_5 = arith.constant -1.000000e+00 : f32
    %cst_6 = arith.constant 1.000000e+00 : f32
    %8 = vector.broadcast %cst_5 : f32 to vector<8x8xf32>
    %9 = arith.maximumf %8, %7 : vector<8x8xf32>
    %10 = vector.broadcast %cst_6 : f32 to vector<8x8xf32>
    %11 = arith.minimumf %10, %9 : vector<8x8xf32>
    %c0_7 = arith.constant 0 : index
    %c0_8 = arith.constant 0 : index
    %12 = vector.load %arg4[%c0_7, %c0_8] : memref<8x32xf32, #tpu.memory_space<vmem>>, vector<8x32xf32>
    %cst_9 = arith.constant dense<0.000000e+00> : vector<8x32xf32>
    %13 = tpu.matmul %11, %12, %cst_9 {dimension_numbers = #tpu.dot_dimension_numbers<[1], [0], [0], [1], [0, 0, 1, 1], [], []>} : vector<8x8xf32>, vector<8x32xf32>, vector<8x32xf32> -> vector<8x32xf32>
    %c0_10 = arith.constant 0 : index
    %c0_11 = arith.constant 0 : index
    %14 = vector.load %arg5[%c0_10, %c0_11] : memref<1x32xf32, #tpu.memory_space<vmem>>, vector<1x32xf32>
    %15 = vector.broadcast %14 : vector<1x32xf32> to vector<8x32xf32>
    %16 = arith.addf %13, %15 : vector<8x32xf32>
    %cst_12 = arith.constant 0.000000e+00 : f32
    %17 = vector.broadcast %cst_12 : f32 to vector<8x32xf32>
    %18 = arith.maximumf %16, %17 : vector<8x32xf32>
    %19 = arith.truncf %18 : vector<8x32xf32> to vector<8x32xbf16>
    %20 = tpu.concatenate %11, %2 in 1 : vector<8x8xf32>, vector<8x16xf32> -> vector<8x24xf32>
    %21 = vector.extract_strided_slice %20 {offsets = [0, 0], sizes = [8, 1], strides = [1, 1]} : vector<8x24xf32> to vector<8x1xf32>
    %22 = vector.broadcast %21 : vector<8x1xf32> to vector<8x32xf32>
    %23 = arith.mulf %22, %18 : vector<8x32xf32>
    %24 = vector.extract_strided_slice %20 {offsets = [0, 1], sizes = [8, 1], strides = [1, 1]} : vector<8x24xf32> to vector<8x1xf32>
    %25 = vector.broadcast %24 : vector<8x1xf32> to vector<8x32xf32>
    %26 = arith.mulf %25, %18 : vector<8x32xf32>
    %27 = vector.extract_strided_slice %20 {offsets = [0, 2], sizes = [8, 1], strides = [1, 1]} : vector<8x24xf32> to vector<8x1xf32>
    %28 = vector.broadcast %27 : vector<8x1xf32> to vector<8x32xf32>
    %29 = arith.mulf %28, %18 : vector<8x32xf32>
    %30 = vector.extract_strided_slice %20 {offsets = [0, 3], sizes = [8, 1], strides = [1, 1]} : vector<8x24xf32> to vector<8x1xf32>
    %31 = vector.broadcast %30 : vector<8x1xf32> to vector<8x32xf32>
    %32 = arith.mulf %31, %18 : vector<8x32xf32>
    %33 = vector.extract_strided_slice %20 {offsets = [0, 4], sizes = [8, 1], strides = [1, 1]} : vector<8x24xf32> to vector<8x1xf32>
    %34 = vector.broadcast %33 : vector<8x1xf32> to vector<8x32xf32>
    %35 = arith.mulf %34, %18 : vector<8x32xf32>
    %36 = vector.extract_strided_slice %20 {offsets = [0, 5], sizes = [8, 1], strides = [1, 1]} : vector<8x24xf32> to vector<8x1xf32>
    %37 = vector.broadcast %36 : vector<8x1xf32> to vector<8x32xf32>
    %38 = arith.mulf %37, %18 : vector<8x32xf32>
    %39 = vector.extract_strided_slice %20 {offsets = [0, 6], sizes = [8, 1], strides = [1, 1]} : vector<8x24xf32> to vector<8x1xf32>
    %40 = vector.broadcast %39 : vector<8x1xf32> to vector<8x32xf32>
    %41 = arith.mulf %40, %18 : vector<8x32xf32>
    %42 = vector.extract_strided_slice %20 {offsets = [0, 7], sizes = [8, 1], strides = [1, 1]} : vector<8x24xf32> to vector<8x1xf32>
    %43 = vector.broadcast %42 : vector<8x1xf32> to vector<8x32xf32>
    %44 = arith.mulf %43, %18 : vector<8x32xf32>
    %45 = vector.extract_strided_slice %20 {offsets = [0, 8], sizes = [8, 1], strides = [1, 1]} : vector<8x24xf32> to vector<8x1xf32>
    %46 = vector.broadcast %45 : vector<8x1xf32> to vector<8x32xf32>
    %47 = arith.mulf %46, %18 : vector<8x32xf32>
    %48 = vector.extract_strided_slice %20 {offsets = [0, 9], sizes = [8, 1], strides = [1, 1]} : vector<8x24xf32> to vector<8x1xf32>
    %49 = vector.broadcast %48 : vector<8x1xf32> to vector<8x32xf32>
    %50 = arith.mulf %49, %18 : vector<8x32xf32>
    %51 = vector.extract_strided_slice %20 {offsets = [0, 10], sizes = [8, 1], strides = [1, 1]} : vector<8x24xf32> to vector<8x1xf32>
    %52 = vector.broadcast %51 : vector<8x1xf32> to vector<8x32xf32>
    %53 = arith.mulf %52, %18 : vector<8x32xf32>
    %54 = vector.extract_strided_slice %20 {offsets = [0, 11], sizes = [8, 1], strides = [1, 1]} : vector<8x24xf32> to vector<8x1xf32>
    %55 = vector.broadcast %54 : vector<8x1xf32> to vector<8x32xf32>
    %56 = arith.mulf %55, %18 : vector<8x32xf32>
    %57 = vector.extract_strided_slice %20 {offsets = [0, 12], sizes = [8, 1], strides = [1, 1]} : vector<8x24xf32> to vector<8x1xf32>
    %58 = vector.broadcast %57 : vector<8x1xf32> to vector<8x32xf32>
    %59 = arith.mulf %58, %18 : vector<8x32xf32>
    %60 = vector.extract_strided_slice %20 {offsets = [0, 13], sizes = [8, 1], strides = [1, 1]} : vector<8x24xf32> to vector<8x1xf32>
    %61 = vector.broadcast %60 : vector<8x1xf32> to vector<8x32xf32>
    %62 = arith.mulf %61, %18 : vector<8x32xf32>
    %63 = vector.extract_strided_slice %20 {offsets = [0, 14], sizes = [8, 1], strides = [1, 1]} : vector<8x24xf32> to vector<8x1xf32>
    %64 = vector.broadcast %63 : vector<8x1xf32> to vector<8x32xf32>
    %65 = arith.mulf %64, %18 : vector<8x32xf32>
    %66 = vector.extract_strided_slice %20 {offsets = [0, 15], sizes = [8, 1], strides = [1, 1]} : vector<8x24xf32> to vector<8x1xf32>
    %67 = vector.broadcast %66 : vector<8x1xf32> to vector<8x32xf32>
    %68 = arith.mulf %67, %18 : vector<8x32xf32>
    %69 = vector.extract_strided_slice %20 {offsets = [0, 16], sizes = [8, 1], strides = [1, 1]} : vector<8x24xf32> to vector<8x1xf32>
    %70 = vector.broadcast %69 : vector<8x1xf32> to vector<8x32xf32>
    %71 = arith.mulf %70, %18 : vector<8x32xf32>
    %72 = vector.extract_strided_slice %20 {offsets = [0, 17], sizes = [8, 1], strides = [1, 1]} : vector<8x24xf32> to vector<8x1xf32>
    %73 = vector.broadcast %72 : vector<8x1xf32> to vector<8x32xf32>
    %74 = arith.mulf %73, %18 : vector<8x32xf32>
    %75 = vector.extract_strided_slice %20 {offsets = [0, 18], sizes = [8, 1], strides = [1, 1]} : vector<8x24xf32> to vector<8x1xf32>
    %76 = vector.broadcast %75 : vector<8x1xf32> to vector<8x32xf32>
    %77 = arith.mulf %76, %18 : vector<8x32xf32>
    %78 = vector.extract_strided_slice %20 {offsets = [0, 19], sizes = [8, 1], strides = [1, 1]} : vector<8x24xf32> to vector<8x1xf32>
    %79 = vector.broadcast %78 : vector<8x1xf32> to vector<8x32xf32>
    %80 = arith.mulf %79, %18 : vector<8x32xf32>
    %81 = vector.extract_strided_slice %20 {offsets = [0, 20], sizes = [8, 1], strides = [1, 1]} : vector<8x24xf32> to vector<8x1xf32>
    %82 = vector.broadcast %81 : vector<8x1xf32> to vector<8x32xf32>
    %83 = arith.mulf %82, %18 : vector<8x32xf32>
    %84 = vector.extract_strided_slice %20 {offsets = [0, 21], sizes = [8, 1], strides = [1, 1]} : vector<8x24xf32> to vector<8x1xf32>
    %85 = vector.broadcast %84 : vector<8x1xf32> to vector<8x32xf32>
    %86 = arith.mulf %85, %18 : vector<8x32xf32>
    %87 = vector.extract_strided_slice %20 {offsets = [0, 22], sizes = [8, 1], strides = [1, 1]} : vector<8x24xf32> to vector<8x1xf32>
    %88 = vector.broadcast %87 : vector<8x1xf32> to vector<8x32xf32>
    %89 = arith.mulf %88, %18 : vector<8x32xf32>
    %90 = vector.extract_strided_slice %20 {offsets = [0, 23], sizes = [8, 1], strides = [1, 1]} : vector<8x24xf32> to vector<8x1xf32>
    %91 = vector.broadcast %90 : vector<8x1xf32> to vector<8x32xf32>
    %92 = arith.mulf %91, %18 : vector<8x32xf32>
    %93 = tpu.concatenate %23, %26, %29, %32, %35, %38, %41, %44, %47, %50, %53, %56, %59, %62, %65, %68 in 1 : vector<8x32xf32>, vector<8x32xf32>, vector<8x32xf32>, vector<8x32xf32>, vector<8x32xf32>, vector<8x32xf32>, vector<8x32xf32>, vector<8x32xf32>, vector<8x32xf32>, vector<8x32xf32>, vector<8x32xf32>, vector<8x32xf32>, vector<8x32xf32>, vector<8x32xf32>, vector<8x32xf32>, vector<8x32xf32> -> vector<8x512xf32>
    %94 = tpu.concatenate %71, %74, %77, %80, %83, %86, %89, %92 in 1 : vector<8x32xf32>, vector<8x32xf32>, vector<8x32xf32>, vector<8x32xf32>, vector<8x32xf32>, vector<8x32xf32>, vector<8x32xf32>, vector<8x32xf32> -> vector<8x256xf32>
    %95 = tpu.concatenate %93, %94 in 1 : vector<8x512xf32>, vector<8x256xf32> -> vector<8x768xf32>
    %96 = arith.truncf %95 : vector<8x768xf32> to vector<8x768xbf16>
    %c0_13 = arith.constant 0 : index
    %c0_14 = arith.constant 0 : index
    %97 = vector.load %arg6[%c0_13, %c0_14] : memref<768x32xbf16, #tpu.memory_space<vmem>>, vector<768x32xbf16>
    %cst_15 = arith.constant dense<0.000000e+00> : vector<8x32xf32>
    %98 = tpu.matmul %96, %97, %cst_15 {dimension_numbers = #tpu.dot_dimension_numbers<[1], [0], [0], [1], [0, 0, 1, 1], [], []>} : vector<8x768xbf16>, vector<768x32xbf16>, vector<8x32xf32> -> vector<8x32xf32>
    %c0_16 = arith.constant 0 : index
    %c0_17 = arith.constant 0 : index
    %99 = vector.load %arg8[%c0_16, %c0_17] : memref<32x32xbf16, #tpu.memory_space<vmem>>, vector<32x32xbf16>
    %cst_18 = arith.constant dense<0.000000e+00> : vector<8x32xf32>
    %100 = tpu.matmul %19, %99, %cst_18 {dimension_numbers = #tpu.dot_dimension_numbers<[1], [0], [0], [1], [0, 0, 1, 1], [], []>} : vector<8x32xbf16>, vector<32x32xbf16>, vector<8x32xf32> -> vector<8x32xf32>
    %101 = arith.addf %98, %100 : vector<8x32xf32>
    %c0_19 = arith.constant 0 : index
    %c0_20 = arith.constant 0 : index
    %102 = vector.load %arg7[%c0_19, %c0_20] : memref<24x32xf32, #tpu.memory_space<vmem>>, vector<24x32xf32>
    %cst_21 = arith.constant dense<0.000000e+00> : vector<8x32xf32>
    %103 = tpu.matmul %20, %102, %cst_21 {dimension_numbers = #tpu.dot_dimension_numbers<[1], [0], [0], [1], [0, 0, 1, 1], [], []>} : vector<8x24xf32>, vector<24x32xf32>, vector<8x32xf32> -> vector<8x32xf32>
    %104 = arith.addf %101, %103 : vector<8x32xf32>
    %c0_22 = arith.constant 0 : index
    %c0_23 = arith.constant 0 : index
    %105 = vector.load %arg9[%c0_22, %c0_23] : memref<1x32xf32, #tpu.memory_space<vmem>>, vector<1x32xf32>
    %106 = vector.broadcast %105 : vector<1x32xf32> to vector<8x32xf32>
    %107 = arith.addf %104, %106 : vector<8x32xf32>
    %cst_24 = arith.constant 0.000000e+00 : f32
    %108 = vector.broadcast %cst_24 : f32 to vector<8x32xf32>
    %109 = arith.maximumf %107, %108 : vector<8x32xf32>
    %c0_25 = arith.constant 0 : index
    %c0_26 = arith.constant 0 : index
    %110 = vector.load %arg10[%c0_25, %c0_26] : memref<32x160xbf16, #tpu.memory_space<vmem>>, vector<32x160xbf16>
    %cst_27 = arith.constant dense<0.000000e+00> : vector<8x160xf32>
    %111 = tpu.matmul %19, %110, %cst_27 {dimension_numbers = #tpu.dot_dimension_numbers<[1], [0], [0], [1], [0, 0, 1, 1], [], []>} : vector<8x32xbf16>, vector<32x160xbf16>, vector<8x160xf32> -> vector<8x160xf32>
    %c0_28 = arith.constant 0 : index
    %c0_29 = arith.constant 0 : index
    %112 = vector.load %arg11[%c0_28, %c0_29] : memref<1x160xf32, #tpu.memory_space<vmem>>, vector<1x160xf32>
    %113 = vector.broadcast %112 : vector<1x160xf32> to vector<8x160xf32>
    %114 = arith.addf %111, %113 : vector<8x160xf32>
    %c0_30 = arith.constant 0 : index
    %c0_31 = arith.constant 0 : index
    %115 = vector.load %arg12[%c0_30, %c0_31] : memref<32x5xf32, #tpu.memory_space<vmem>>, vector<32x5xf32>
    %cst_32 = arith.constant dense<0.000000e+00> : vector<8x5xf32>
    %116 = tpu.matmul %18, %115, %cst_32 {dimension_numbers = #tpu.dot_dimension_numbers<[1], [0], [0], [1], [0, 0, 1, 1], [], []>} : vector<8x32xf32>, vector<32x5xf32>, vector<8x5xf32> -> vector<8x5xf32>
    %c0_33 = arith.constant 0 : index
    %c0_34 = arith.constant 0 : index
    %117 = vector.load %arg13[%c0_33, %c0_34] : memref<1x5xf32, #tpu.memory_space<vmem>>, vector<1x5xf32>
    %118 = vector.broadcast %117 : vector<1x5xf32> to vector<8x5xf32>
    %119 = arith.addf %116, %118 : vector<8x5xf32>
    %120 = vector.extract_strided_slice %114 {offsets = [0, 0], sizes = [8, 32], strides = [1, 1]} : vector<8x160xf32> to vector<8x32xf32>
    %121 = arith.mulf %109, %120 : vector<8x32xf32>
    %cst_35 = arith.constant dense<0.000000e+00> : vector<8xf32>
    %122 = vector.multi_reduction <add>, %121, %cst_35 [1] : vector<8x32xf32> to vector<8xf32>
    %123 = vector.shape_cast %122 : vector<8xf32> to vector<8x1xf32>
    %124 = vector.extract_strided_slice %114 {offsets = [0, 32], sizes = [8, 32], strides = [1, 1]} : vector<8x160xf32> to vector<8x32xf32>
    %125 = arith.mulf %109, %124 : vector<8x32xf32>
    %cst_36 = arith.constant dense<0.000000e+00> : vector<8xf32>
    %126 = vector.multi_reduction <add>, %125, %cst_36 [1] : vector<8x32xf32> to vector<8xf32>
    %127 = vector.shape_cast %126 : vector<8xf32> to vector<8x1xf32>
    %128 = vector.extract_strided_slice %114 {offsets = [0, 64], sizes = [8, 32], strides = [1, 1]} : vector<8x160xf32> to vector<8x32xf32>
    %129 = arith.mulf %109, %128 : vector<8x32xf32>
    %cst_37 = arith.constant dense<0.000000e+00> : vector<8xf32>
    %130 = vector.multi_reduction <add>, %129, %cst_37 [1] : vector<8x32xf32> to vector<8xf32>
    %131 = vector.shape_cast %130 : vector<8xf32> to vector<8x1xf32>
    %132 = vector.extract_strided_slice %114 {offsets = [0, 96], sizes = [8, 32], strides = [1, 1]} : vector<8x160xf32> to vector<8x32xf32>
    %133 = arith.mulf %109, %132 : vector<8x32xf32>
    %cst_38 = arith.constant dense<0.000000e+00> : vector<8xf32>
    %134 = vector.multi_reduction <add>, %133, %cst_38 [1] : vector<8x32xf32> to vector<8xf32>
    %135 = vector.shape_cast %134 : vector<8xf32> to vector<8x1xf32>
    %136 = vector.extract_strided_slice %114 {offsets = [0, 128], sizes = [8, 32], strides = [1, 1]} : vector<8x160xf32> to vector<8x32xf32>
    %137 = arith.mulf %109, %136 : vector<8x32xf32>
    %cst_39 = arith.constant dense<0.000000e+00> : vector<8xf32>
    %138 = vector.multi_reduction <add>, %137, %cst_39 [1] : vector<8x32xf32> to vector<8xf32>
    %139 = vector.shape_cast %138 : vector<8xf32> to vector<8x1xf32>
    %140 = tpu.concatenate %123, %127, %131, %135, %139 in 1 : vector<8x1xf32>, vector<8x1xf32>, vector<8x1xf32>, vector<8x1xf32>, vector<8x1xf32> -> vector<8x5xf32>
    %141 = arith.addf %140, %119 : vector<8x5xf32>
    %cst_40 = arith.constant dense<0xFF800000> : vector<8xf32>
    %142 = vector.multi_reduction <maximumf>, %141, %cst_40 [1] : vector<8x5xf32> to vector<8xf32>
    %143 = vector.shape_cast %142 : vector<8xf32> to vector<8x1xf32>
    %144 = vector.broadcast %143 : vector<8x1xf32> to vector<8x5xf32>
    %145 = arith.subf %141, %144 : vector<8x5xf32>
    %146 = math.exp %145 : vector<8x5xf32>
    %cst_41 = arith.constant dense<0.000000e+00> : vector<8xf32>
    %147 = vector.multi_reduction <add>, %146, %cst_41 [1] : vector<8x5xf32> to vector<8xf32>
    %148 = vector.shape_cast %147 : vector<8xf32> to vector<8x1xf32>
    %149 = vector.broadcast %143 : vector<8x1xf32> to vector<8x5xf32>
    %150 = arith.subf %141, %149 : vector<8x5xf32>
    %151 = math.log %148 : vector<8x1xf32>
    %152 = vector.broadcast %151 : vector<8x1xf32> to vector<8x5xf32>
    %153 = arith.subf %150, %152 : vector<8x5xf32>
    %154 = arith.mulf %146, %153 : vector<8x5xf32>
    %cst_42 = arith.constant dense<0.000000e+00> : vector<8xf32>
    %155 = vector.multi_reduction <add>, %154, %cst_42 [1] : vector<8x5xf32> to vector<8xf32>
    %156 = vector.shape_cast %155 : vector<8xf32> to vector<8x1xf32>
    %cst_43 = arith.constant 0.000000e+00 : f32
    %157 = vector.broadcast %cst_43 : f32 to vector<8x1xf32>
    %158 = arith.subf %157, %156 : vector<8x1xf32>
    %159 = arith.divf %158, %148 : vector<8x1xf32>
    %c0_44 = arith.constant 0 : index
    %c0_45 = arith.constant 0 : index
    %160 = vector.load %arg14[%c0_44, %c0_45] : memref<6x8xf32, #tpu.memory_space<vmem>>, vector<6x8xf32>
    %cst_46 = arith.constant dense<0.000000e+00> : vector<8x8xf32>
    %161 = tpu.matmul %1, %160, %cst_46 {dimension_numbers = #tpu.dot_dimension_numbers<[1], [0], [0], [1], [0, 0, 1, 1], [], []>} : vector<8x6xf32>, vector<6x8xf32>, vector<8x8xf32> -> vector<8x8xf32>
    %c0_47 = arith.constant 0 : index
    %c0_48 = arith.constant 0 : index
    %162 = vector.load %arg15[%c0_47, %c0_48] : memref<1x8xf32, #tpu.memory_space<vmem>>, vector<1x8xf32>
    %163 = vector.broadcast %162 : vector<1x8xf32> to vector<8x8xf32>
    %164 = arith.addf %161, %163 : vector<8x8xf32>
    %cst_49 = arith.constant -1.000000e+00 : f32
    %cst_50 = arith.constant 1.000000e+00 : f32
    %165 = vector.broadcast %cst_49 : f32 to vector<8x8xf32>
    %166 = arith.maximumf %165, %164 : vector<8x8xf32>
    %167 = vector.broadcast %cst_50 : f32 to vector<8x8xf32>
    %168 = arith.minimumf %167, %166 : vector<8x8xf32>
    %c0_51 = arith.constant 0 : index
    %c0_52 = arith.constant 0 : index
    %169 = vector.load %arg16[%c0_51, %c0_52] : memref<8x32xf32, #tpu.memory_space<vmem>>, vector<8x32xf32>
    %cst_53 = arith.constant dense<0.000000e+00> : vector<8x32xf32>
    %170 = tpu.matmul %168, %169, %cst_53 {dimension_numbers = #tpu.dot_dimension_numbers<[1], [0], [0], [1], [0, 0, 1, 1], [], []>} : vector<8x8xf32>, vector<8x32xf32>, vector<8x32xf32> -> vector<8x32xf32>
    %c0_54 = arith.constant 0 : index
    %c0_55 = arith.constant 0 : index
    %171 = vector.load %arg17[%c0_54, %c0_55] : memref<1x32xf32, #tpu.memory_space<vmem>>, vector<1x32xf32>
    %172 = vector.broadcast %171 : vector<1x32xf32> to vector<8x32xf32>
    %173 = arith.addf %170, %172 : vector<8x32xf32>
    %cst_56 = arith.constant 0.000000e+00 : f32
    %174 = vector.broadcast %cst_56 : f32 to vector<8x32xf32>
    %175 = arith.maximumf %173, %174 : vector<8x32xf32>
    %176 = arith.truncf %175 : vector<8x32xf32> to vector<8x32xbf16>
    %177 = tpu.concatenate %168, %2 in 1 : vector<8x8xf32>, vector<8x16xf32> -> vector<8x24xf32>
    %178 = vector.extract_strided_slice %177 {offsets = [0, 0], sizes = [8, 1], strides = [1, 1]} : vector<8x24xf32> to vector<8x1xf32>
    %179 = vector.broadcast %178 : vector<8x1xf32> to vector<8x32xf32>
    %180 = arith.mulf %179, %175 : vector<8x32xf32>
    %181 = vector.extract_strided_slice %177 {offsets = [0, 1], sizes = [8, 1], strides = [1, 1]} : vector<8x24xf32> to vector<8x1xf32>
    %182 = vector.broadcast %181 : vector<8x1xf32> to vector<8x32xf32>
    %183 = arith.mulf %182, %175 : vector<8x32xf32>
    %184 = vector.extract_strided_slice %177 {offsets = [0, 2], sizes = [8, 1], strides = [1, 1]} : vector<8x24xf32> to vector<8x1xf32>
    %185 = vector.broadcast %184 : vector<8x1xf32> to vector<8x32xf32>
    %186 = arith.mulf %185, %175 : vector<8x32xf32>
    %187 = vector.extract_strided_slice %177 {offsets = [0, 3], sizes = [8, 1], strides = [1, 1]} : vector<8x24xf32> to vector<8x1xf32>
    %188 = vector.broadcast %187 : vector<8x1xf32> to vector<8x32xf32>
    %189 = arith.mulf %188, %175 : vector<8x32xf32>
    %190 = vector.extract_strided_slice %177 {offsets = [0, 4], sizes = [8, 1], strides = [1, 1]} : vector<8x24xf32> to vector<8x1xf32>
    %191 = vector.broadcast %190 : vector<8x1xf32> to vector<8x32xf32>
    %192 = arith.mulf %191, %175 : vector<8x32xf32>
    %193 = vector.extract_strided_slice %177 {offsets = [0, 5], sizes = [8, 1], strides = [1, 1]} : vector<8x24xf32> to vector<8x1xf32>
    %194 = vector.broadcast %193 : vector<8x1xf32> to vector<8x32xf32>
    %195 = arith.mulf %194, %175 : vector<8x32xf32>
    %196 = vector.extract_strided_slice %177 {offsets = [0, 6], sizes = [8, 1], strides = [1, 1]} : vector<8x24xf32> to vector<8x1xf32>
    %197 = vector.broadcast %196 : vector<8x1xf32> to vector<8x32xf32>
    %198 = arith.mulf %197, %175 : vector<8x32xf32>
    %199 = vector.extract_strided_slice %177 {offsets = [0, 7], sizes = [8, 1], strides = [1, 1]} : vector<8x24xf32> to vector<8x1xf32>
    %200 = vector.broadcast %199 : vector<8x1xf32> to vector<8x32xf32>
    %201 = arith.mulf %200, %175 : vector<8x32xf32>
    %202 = vector.extract_strided_slice %177 {offsets = [0, 8], sizes = [8, 1], strides = [1, 1]} : vector<8x24xf32> to vector<8x1xf32>
    %203 = vector.broadcast %202 : vector<8x1xf32> to vector<8x32xf32>
    %204 = arith.mulf %203, %175 : vector<8x32xf32>
    %205 = vector.extract_strided_slice %177 {offsets = [0, 9], sizes = [8, 1], strides = [1, 1]} : vector<8x24xf32> to vector<8x1xf32>
    %206 = vector.broadcast %205 : vector<8x1xf32> to vector<8x32xf32>
    %207 = arith.mulf %206, %175 : vector<8x32xf32>
    %208 = vector.extract_strided_slice %177 {offsets = [0, 10], sizes = [8, 1], strides = [1, 1]} : vector<8x24xf32> to vector<8x1xf32>
    %209 = vector.broadcast %208 : vector<8x1xf32> to vector<8x32xf32>
    %210 = arith.mulf %209, %175 : vector<8x32xf32>
    %211 = vector.extract_strided_slice %177 {offsets = [0, 11], sizes = [8, 1], strides = [1, 1]} : vector<8x24xf32> to vector<8x1xf32>
    %212 = vector.broadcast %211 : vector<8x1xf32> to vector<8x32xf32>
    %213 = arith.mulf %212, %175 : vector<8x32xf32>
    %214 = vector.extract_strided_slice %177 {offsets = [0, 12], sizes = [8, 1], strides = [1, 1]} : vector<8x24xf32> to vector<8x1xf32>
    %215 = vector.broadcast %214 : vector<8x1xf32> to vector<8x32xf32>
    %216 = arith.mulf %215, %175 : vector<8x32xf32>
    %217 = vector.extract_strided_slice %177 {offsets = [0, 13], sizes = [8, 1], strides = [1, 1]} : vector<8x24xf32> to vector<8x1xf32>
    %218 = vector.broadcast %217 : vector<8x1xf32> to vector<8x32xf32>
    %219 = arith.mulf %218, %175 : vector<8x32xf32>
    %220 = vector.extract_strided_slice %177 {offsets = [0, 14], sizes = [8, 1], strides = [1, 1]} : vector<8x24xf32> to vector<8x1xf32>
    %221 = vector.broadcast %220 : vector<8x1xf32> to vector<8x32xf32>
    %222 = arith.mulf %221, %175 : vector<8x32xf32>
    %223 = vector.extract_strided_slice %177 {offsets = [0, 15], sizes = [8, 1], strides = [1, 1]} : vector<8x24xf32> to vector<8x1xf32>
    %224 = vector.broadcast %223 : vector<8x1xf32> to vector<8x32xf32>
    %225 = arith.mulf %224, %175 : vector<8x32xf32>
    %226 = vector.extract_strided_slice %177 {offsets = [0, 16], sizes = [8, 1], strides = [1, 1]} : vector<8x24xf32> to vector<8x1xf32>
    %227 = vector.broadcast %226 : vector<8x1xf32> to vector<8x32xf32>
    %228 = arith.mulf %227, %175 : vector<8x32xf32>
    %229 = vector.extract_strided_slice %177 {offsets = [0, 17], sizes = [8, 1], strides = [1, 1]} : vector<8x24xf32> to vector<8x1xf32>
    %230 = vector.broadcast %229 : vector<8x1xf32> to vector<8x32xf32>
    %231 = arith.mulf %230, %175 : vector<8x32xf32>
    %232 = vector.extract_strided_slice %177 {offsets = [0, 18], sizes = [8, 1], strides = [1, 1]} : vector<8x24xf32> to vector<8x1xf32>
    %233 = vector.broadcast %232 : vector<8x1xf32> to vector<8x32xf32>
    %234 = arith.mulf %233, %175 : vector<8x32xf32>
    %235 = vector.extract_strided_slice %177 {offsets = [0, 19], sizes = [8, 1], strides = [1, 1]} : vector<8x24xf32> to vector<8x1xf32>
    %236 = vector.broadcast %235 : vector<8x1xf32> to vector<8x32xf32>
    %237 = arith.mulf %236, %175 : vector<8x32xf32>
    %238 = vector.extract_strided_slice %177 {offsets = [0, 20], sizes = [8, 1], strides = [1, 1]} : vector<8x24xf32> to vector<8x1xf32>
    %239 = vector.broadcast %238 : vector<8x1xf32> to vector<8x32xf32>
    %240 = arith.mulf %239, %175 : vector<8x32xf32>
    %241 = vector.extract_strided_slice %177 {offsets = [0, 21], sizes = [8, 1], strides = [1, 1]} : vector<8x24xf32> to vector<8x1xf32>
    %242 = vector.broadcast %241 : vector<8x1xf32> to vector<8x32xf32>
    %243 = arith.mulf %242, %175 : vector<8x32xf32>
    %244 = vector.extract_strided_slice %177 {offsets = [0, 22], sizes = [8, 1], strides = [1, 1]} : vector<8x24xf32> to vector<8x1xf32>
    %245 = vector.broadcast %244 : vector<8x1xf32> to vector<8x32xf32>
    %246 = arith.mulf %245, %175 : vector<8x32xf32>
    %247 = vector.extract_strided_slice %177 {offsets = [0, 23], sizes = [8, 1], strides = [1, 1]} : vector<8x24xf32> to vector<8x1xf32>
    %248 = vector.broadcast %247 : vector<8x1xf32> to vector<8x32xf32>
    %249 = arith.mulf %248, %175 : vector<8x32xf32>
    %250 = tpu.concatenate %180, %183, %186, %189, %192, %195, %198, %201, %204, %207, %210, %213, %216, %219, %222, %225 in 1 : vector<8x32xf32>, vector<8x32xf32>, vector<8x32xf32>, vector<8x32xf32>, vector<8x32xf32>, vector<8x32xf32>, vector<8x32xf32>, vector<8x32xf32>, vector<8x32xf32>, vector<8x32xf32>, vector<8x32xf32>, vector<8x32xf32>, vector<8x32xf32>, vector<8x32xf32>, vector<8x32xf32>, vector<8x32xf32> -> vector<8x512xf32>
    %251 = tpu.concatenate %228, %231, %234, %237, %240, %243, %246, %249 in 1 : vector<8x32xf32>, vector<8x32xf32>, vector<8x32xf32>, vector<8x32xf32>, vector<8x32xf32>, vector<8x32xf32>, vector<8x32xf32>, vector<8x32xf32> -> vector<8x256xf32>
    %252 = tpu.concatenate %250, %251 in 1 : vector<8x512xf32>, vector<8x256xf32> -> vector<8x768xf32>
    %253 = arith.truncf %252 : vector<8x768xf32> to vector<8x768xbf16>
    %c0_57 = arith.constant 0 : index
    %c0_58 = arith.constant 0 : index
    %254 = vector.load %arg18[%c0_57, %c0_58] : memref<768x32xbf16, #tpu.memory_space<vmem>>, vector<768x32xbf16>
    %cst_59 = arith.constant dense<0.000000e+00> : vector<8x32xf32>
    %255 = tpu.matmul %253, %254, %cst_59 {dimension_numbers = #tpu.dot_dimension_numbers<[1], [0], [0], [1], [0, 0, 1, 1], [], []>} : vector<8x768xbf16>, vector<768x32xbf16>, vector<8x32xf32> -> vector<8x32xf32>
    %c0_60 = arith.constant 0 : index
    %c0_61 = arith.constant 0 : index
    %256 = vector.load %arg20[%c0_60, %c0_61] : memref<32x32xbf16, #tpu.memory_space<vmem>>, vector<32x32xbf16>
    %cst_62 = arith.constant dense<0.000000e+00> : vector<8x32xf32>
    %257 = tpu.matmul %176, %256, %cst_62 {dimension_numbers = #tpu.dot_dimension_numbers<[1], [0], [0], [1], [0, 0, 1, 1], [], []>} : vector<8x32xbf16>, vector<32x32xbf16>, vector<8x32xf32> -> vector<8x32xf32>
    %258 = arith.addf %255, %257 : vector<8x32xf32>
    %c0_63 = arith.constant 0 : index
    %c0_64 = arith.constant 0 : index
    %259 = vector.load %arg19[%c0_63, %c0_64] : memref<24x32xf32, #tpu.memory_space<vmem>>, vector<24x32xf32>
    %cst_65 = arith.constant dense<0.000000e+00> : vector<8x32xf32>
    %260 = tpu.matmul %177, %259, %cst_65 {dimension_numbers = #tpu.dot_dimension_numbers<[1], [0], [0], [1], [0, 0, 1, 1], [], []>} : vector<8x24xf32>, vector<24x32xf32>, vector<8x32xf32> -> vector<8x32xf32>
    %261 = arith.addf %258, %260 : vector<8x32xf32>
    %c0_66 = arith.constant 0 : index
    %c0_67 = arith.constant 0 : index
    %262 = vector.load %arg21[%c0_66, %c0_67] : memref<1x32xf32, #tpu.memory_space<vmem>>, vector<1x32xf32>
    %263 = vector.broadcast %262 : vector<1x32xf32> to vector<8x32xf32>
    %264 = arith.addf %261, %263 : vector<8x32xf32>
    %cst_68 = arith.constant 0.000000e+00 : f32
    %265 = vector.broadcast %cst_68 : f32 to vector<8x32xf32>
    %266 = arith.maximumf %264, %265 : vector<8x32xf32>
    %c0_69 = arith.constant 0 : index
    %c0_70 = arith.constant 0 : index
    %267 = vector.load %arg22[%c0_69, %c0_70] : memref<32x32xbf16, #tpu.memory_space<vmem>>, vector<32x32xbf16>
    %cst_71 = arith.constant dense<0.000000e+00> : vector<8x32xf32>
    %268 = tpu.matmul %176, %267, %cst_71 {dimension_numbers = #tpu.dot_dimension_numbers<[1], [0], [0], [1], [0, 0, 1, 1], [], []>} : vector<8x32xbf16>, vector<32x32xbf16>, vector<8x32xf32> -> vector<8x32xf32>
    %c0_72 = arith.constant 0 : index
    %c0_73 = arith.constant 0 : index
    %269 = vector.load %arg23[%c0_72, %c0_73] : memref<1x32xf32, #tpu.memory_space<vmem>>, vector<1x32xf32>
    %270 = vector.broadcast %269 : vector<1x32xf32> to vector<8x32xf32>
    %271 = arith.addf %268, %270 : vector<8x32xf32>
    %c0_74 = arith.constant 0 : index
    %c0_75 = arith.constant 0 : index
    %272 = vector.load %arg24[%c0_74, %c0_75] : memref<32x1xf32, #tpu.memory_space<vmem>>, vector<32x1xf32>
    %cst_76 = arith.constant dense<0.000000e+00> : vector<8x1xf32>
    %273 = tpu.matmul %175, %272, %cst_76 {dimension_numbers = #tpu.dot_dimension_numbers<[1], [0], [0], [1], [0, 0, 1, 1], [], []>} : vector<8x32xf32>, vector<32x1xf32>, vector<8x1xf32> -> vector<8x1xf32>
    %c0_77 = arith.constant 0 : index
    %c0_78 = arith.constant 0 : index
    %274 = vector.load %arg25[%c0_77, %c0_78] : memref<1x1xf32, #tpu.memory_space<vmem>>, vector<1x1xf32>
    %275 = vector.broadcast %274 : vector<1x1xf32> to vector<8x1xf32>
    %276 = arith.addf %273, %275 : vector<8x1xf32>
    %277 = arith.mulf %266, %271 : vector<8x32xf32>
    %cst_79 = arith.constant dense<0.000000e+00> : vector<8xf32>
    %278 = vector.multi_reduction <add>, %277, %cst_79 [1] : vector<8x32xf32> to vector<8xf32>
    %279 = vector.shape_cast %278 : vector<8xf32> to vector<8x1xf32>
    %280 = arith.addf %279, %276 : vector<8x1xf32>
    %281 = tpu.concatenate %153, %159, %280 in 1 : vector<8x5xf32>, vector<8x1xf32>, vector<8x1xf32> -> vector<8x7xf32>
    %cst_80 = arith.constant 0.000000e+00 : f32
    %282 = vector.broadcast %cst_80 : f32 to vector<8x121xf32>
    %283 = tpu.concatenate %281, %282 in 1 : vector<8x7xf32>, vector<8x121xf32> -> vector<8x128xf32>
    %c0_81 = arith.constant 0 : index
    %c0_82 = arith.constant 0 : index
    %284 = vector.load %arg26[%c0_81, %c0_82] : memref<8x128xf32, #tpu.memory_space<vmem>>, vector<8x128xf32>
    tpu.vector_store %arg26[%c0_81, %c0_82], %283 {strides = array<i32>} : memref<8x128xf32, #tpu.memory_space<vmem>>, vector<8x128xf32>,
    return
  }
  func.func @transform_0(%arg0: i32) -> (i32, i32) {
    %c0_i32 = arith.constant 0 : i32
    %c0_i32_0 = arith.constant 0 : i32
    return %arg0, %c0_i32 : i32, i32
  }
  func.func @transform_1(%arg0: i32) -> (i32, i32) {
    %c0_i32 = arith.constant 0 : i32
    %c0_i32_0 = arith.constant 0 : i32
    %c0_i32_1 = arith.constant 0 : i32
    return %c0_i32, %c0_i32_0 : i32, i32
  }
  func.func @transform_2(%arg0: i32) -> (i32, i32) {
    %c0_i32 = arith.constant 0 : i32
    %c0_i32_0 = arith.constant 0 : i32
    %c0_i32_1 = arith.constant 0 : i32
    return %c0_i32, %c0_i32_0 : i32, i32
  }
  func.func @transform_3(%arg0: i32) -> (i32, i32) {
    %c0_i32 = arith.constant 0 : i32
    %c0_i32_0 = arith.constant 0 : i32
    %c0_i32_1 = arith.constant 0 : i32
    return %c0_i32, %c0_i32_0 : i32, i32
  }
  func.func @transform_4(%arg0: i32) -> (i32, i32) {
    %c0_i32 = arith.constant 0 : i32
    %c0_i32_0 = arith.constant 0 : i32
    %c0_i32_1 = arith.constant 0 : i32
    return %c0_i32, %c0_i32_0 : i32, i32
  }
  func.func @transform_5(%arg0: i32) -> (i32, i32) {
    %c0_i32 = arith.constant 0 : i32
    %c0_i32_0 = arith.constant 0 : i32
    %c0_i32_1 = arith.constant 0 : i32
    return %c0_i32, %c0_i32_0 : i32, i32
  }
  func.func @transform_6(%arg0: i32) -> (i32, i32) {
    %c0_i32 = arith.constant 0 : i32
    %c0_i32_0 = arith.constant 0 : i32
    %c0_i32_1 = arith.constant 0 : i32
    return %c0_i32, %c0_i32_0 : i32, i32
  }
  func.func @transform_7(%arg0: i32) -> (i32, i32) {
    %c0_i32 = arith.constant 0 : i32
    %c0_i32_0 = arith.constant 0 : i32
    %c0_i32_1 = arith.constant 0 : i32
    return %c0_i32, %c0_i32_0 : i32, i32
  }
  func.func @transform_8(%arg0: i32) -> (i32, i32) {
    %c0_i32 = arith.constant 0 : i32
    %c0_i32_0 = arith.constant 0 : i32
    %c0_i32_1 = arith.constant 0 : i32
    return %c0_i32, %c0_i32_0 : i32, i32
  }
  func.func @transform_9(%arg0: i32) -> (i32, i32) {
    %c0_i32 = arith.constant 0 : i32
    %c0_i32_0 = arith.constant 0 : i32
    %c0_i32_1 = arith.constant 0 : i32
    return %c0_i32, %c0_i32_0 : i32, i32
  }
  func.func @transform_10(%arg0: i32) -> (i32, i32) {
    %c0_i32 = arith.constant 0 : i32
    %c0_i32_0 = arith.constant 0 : i32
    %c0_i32_1 = arith.constant 0 : i32
    return %c0_i32, %c0_i32_0 : i32, i32
  }
  func.func @transform_11(%arg0: i32) -> (i32, i32) {
    %c0_i32 = arith.constant 0 : i32
    %c0_i32_0 = arith.constant 0 : i32
    %c0_i32_1 = arith.constant 0 : i32
    return %c0_i32, %c0_i32_0 : i32, i32
  }
  func.func @transform_12(%arg0: i32) -> (i32, i32) {
    %c0_i32 = arith.constant 0 : i32
    %c0_i32_0 = arith.constant 0 : i32
    %c0_i32_1 = arith.constant 0 : i32
    return %c0_i32, %c0_i32_0 : i32, i32
  }
  func.func @transform_13(%arg0: i32) -> (i32, i32) {
    %c0_i32 = arith.constant 0 : i32
    %c0_i32_0 = arith.constant 0 : i32
    %c0_i32_1 = arith.constant 0 : i32
    return %c0_i32, %c0_i32_0 : i32, i32
  }
  func.func @transform_14(%arg0: i32) -> (i32, i32) {
    %c0_i32 = arith.constant 0 : i32
    %c0_i32_0 = arith.constant 0 : i32
    %c0_i32_1 = arith.constant 0 : i32
    return %c0_i32, %c0_i32_0 : i32, i32
  }
  func.func @transform_15(%arg0: i32) -> (i32, i32) {
    %c0_i32 = arith.constant 0 : i32
    %c0_i32_0 = arith.constant 0 : i32
    %c0_i32_1 = arith.constant 0 : i32
    return %c0_i32, %c0_i32_0 : i32, i32
  }
  func.func @transform_16(%arg0: i32) -> (i32, i32) {
    %c0_i32 = arith.constant 0 : i32
    %c0_i32_0 = arith.constant 0 : i32
    %c0_i32_1 = arith.constant 0 : i32
    return %c0_i32, %c0_i32_0 : i32, i32
  }
  func.func @transform_17(%arg0: i32) -> (i32, i32) {
    %c0_i32 = arith.constant 0 : i32
    %c0_i32_0 = arith.constant 0 : i32
    %c0_i32_1 = arith.constant 0 : i32
    return %c0_i32, %c0_i32_0 : i32, i32
  }
  func.func @transform_18(%arg0: i32) -> (i32, i32) {
    %c0_i32 = arith.constant 0 : i32
    %c0_i32_0 = arith.constant 0 : i32
    %c0_i32_1 = arith.constant 0 : i32
    return %c0_i32, %c0_i32_0 : i32, i32
  }
  func.func @transform_19(%arg0: i32) -> (i32, i32) {
    %c0_i32 = arith.constant 0 : i32
    %c0_i32_0 = arith.constant 0 : i32
    %c0_i32_1 = arith.constant 0 : i32
    return %c0_i32, %c0_i32_0 : i32, i32
  }
  func.func @transform_20(%arg0: i32) -> (i32, i32) {
    %c0_i32 = arith.constant 0 : i32
    %c0_i32_0 = arith.constant 0 : i32
    %c0_i32_1 = arith.constant 0 : i32
    return %c0_i32, %c0_i32_0 : i32, i32
  }
  func.func @transform_21(%arg0: i32) -> (i32, i32) {
    %c0_i32 = arith.constant 0 : i32
    %c0_i32_0 = arith.constant 0 : i32
    %c0_i32_1 = arith.constant 0 : i32
    return %c0_i32, %c0_i32_0 : i32, i32
  }
  func.func @transform_22(%arg0: i32) -> (i32, i32) {
    %c0_i32 = arith.constant 0 : i32
    %c0_i32_0 = arith.constant 0 : i32
    %c0_i32_1 = arith.constant 0 : i32
    return %c0_i32, %c0_i32_0 : i32, i32
  }
  func.func @transform_23(%arg0: i32) -> (i32, i32) {
    %c0_i32 = arith.constant 0 : i32
    %c0_i32_0 = arith.constant 0 : i32
    %c0_i32_1 = arith.constant 0 : i32
    return %c0_i32, %c0_i32_0 : i32, i32
  }
  func.func @transform_24(%arg0: i32) -> (i32, i32) {
    %c0_i32 = arith.constant 0 : i32
    %c0_i32_0 = arith.constant 0 : i32
    %c0_i32_1 = arith.constant 0 : i32
    return %c0_i32, %c0_i32_0 : i32, i32
  }
  func.func @transform_25(%arg0: i32) -> (i32, i32) {
    %c0_i32 = arith.constant 0 : i32
    %c0_i32_0 = arith.constant 0 : i32
    return %arg0, %c0_i32 : i32, i32
  }
}

</mosaic_0001>

<bundles_post_ra>
// kernel: tpu_custom_call.1
= control target key start
LH: loop header
LB: loop body
LE: loop exit
PB: predicated region body
PF: predicated region fallthrough
CT: control target
= control target key end

     0   :  { %s3595_s0 = inlined_call_operand.vmem [shape: f32[8,22], index: 0, kind: input, shape index: {}]   ;;  %s3596_s1 = inlined_call_operand.vmem [shape: f32[6,8], index: 1, kind: input, shape index: {}]   ;;  %s3597_s2 = inlined_call_operand.vmem [shape: f32[1,8], index: 2, kind: input, shape index: {}]   ;;  %s3598_s3 = inlined_call_operand.vmem [shape: f32[8,32], index: 3, kind: input, shape index: {}]   ;;  %s3599_s4 = inlined_call_operand.vmem [shape: f32[1,32], index: 4, kind: input, shape index: {}]   ;;  %s3600_s5 = inlined_call_operand.vmem [shape: bf16[768,32], index: 5, kind: input, shape index: {}]   ;;  %s3601_s6 = inlined_call_operand.vmem [shape: f32[24,32], index: 6, kind: input, shape index: {}]   ;;  %s3602_s7 = inlined_call_operand.vmem [shape: bf16[32,32], index: 7, kind: input, shape index: {}]   ;;  %s3603_s8 = inlined_call_operand.vmem [shape: f32[1,32], index: 8, kind: input, shape index: {}]   ;;  %s3604_s9 = inlined_call_operand.vmem [shape: bf16[32,160], index: 9, kind: input, shape index: {}]   ;;  %s3605_s10 = inlined_call_operand.vmem [shape: f32[1,160], index: 10, kind: input, shape index: {}]   ;;  %s3606_s11 = inlined_call_operand.vmem [shape: f32[32,5], index: 11, kind: input, shape index: {}]   ;;  %s3607_s12 = inlined_call_operand.vmem [shape: f32[1,5], index: 12, kind: input, shape index: {}]   ;;  %s3608_s13 = inlined_call_operand.vmem [shape: f32[6,8], index: 13, kind: input, shape index: {}]   ;;  %s3609_s14 = inlined_call_operand.vmem [shape: f32[1,8], index: 14, kind: input, shape index: {}]   ;;  %s3610_s15 = inlined_call_operand.vmem [shape: f32[8,32], index: 15, kind: input, shape index: {}]   ;;  %s3611_s16 = inlined_call_operand.vmem [shape: f32[1,32], index: 16, kind: input, shape index: {}]   ;;  %s3612_s17 = inlined_call_operand.vmem [shape: bf16[768,32], index: 17, kind: input, shape index: {}]   ;;  %s3613_s18 = inlined_call_operand.vmem [shape: f32[24,32], index: 18, kind: input, shape index: {}]   ;;  %s3614_s19 = inlined_call_operand.vmem [shape: bf16[32,32], index: 19, kind: input, shape index: {}]   ;;  %s3615_s20 = inlined_call_operand.vmem [shape: f32[1,32], index: 20, kind: input, shape index: {}]   ;;  %s3616_s21 = inlined_call_operand.vmem [shape: bf16[32,32], index: 21, kind: input, shape index: {}]   ;;  %s3617_s22 = inlined_call_operand.vmem [shape: f32[1,32], index: 22, kind: input, shape index: {}]   ;;  %s3618_s23 = inlined_call_operand.vmem [shape: f32[32,1], index: 23, kind: input, shape index: {}]   ;;  %s3619_s24 = inlined_call_operand.<no memory space> [shape: f32[1,1], index: 24, kind: input, shape index: {}]   ;;  %s3620_s25 = inlined_call_operand.hbm [shape: f32[8,128], index: 25, kind: output, shape index: {}]  }
   0x1   :  { %3625 = sst [smem:[#allocation6_spill]] %s3595_s0  ;;  %v30_v0 = vstv %s3619_s24 }
   0x2   :  { %3626 = sst [smem:[#allocation7_spill]] %s3596_s1  ;;  %31 = vst [vmem:[#allocation2] sm:$0x1] %v30_v0 }
   0x3   :  { %3627 = sst [smem:[#allocation8_spill]] %s3597_s2 }
   0x4   :  { %3628 = sst [smem:[#allocation9_spill]] %s3598_s3 }
   0x5   :  { %3629 = sst [smem:[#allocation10_spill]] %s3599_s4 }
   0x6   :  { %3630 = sst [smem:[#allocation11_spill]] %s3600_s5 }
   0x7   :  { %3631 = sst [smem:[#allocation12_spill]] %s3601_s6 }
   0x8   :  { %3632 = sst [smem:[#allocation13_spill]] %s3602_s7 }
   0x9   :  { %3633 = sst [smem:[#allocation14_spill]] %s3603_s8 }
   0xa   :  { %3634 = sst [smem:[#allocation15_spill]] %s3604_s9 }
   0xb   :  { %s3635_s7 = sld [smem:[#allocation7_spill]]  ;;  %vm94_vm0 = vcmask 1045504   ;;  %vm90_vm1 = vcmask 48128   ;;  %s2701_s8 = smov 2  }
   0xc   :  { %s3636_s1 = sld [smem:[#allocation6_spill]] }
  0x11   :  { %v85_v1 = vld [vmem:[%s3635_s7] sm:$0x3f] }
  0x12   :  { %v2870_v2 = vld [vmem:[%s3636_s1] sm:$0xff]  ;;  %1959 = vmatpush.msk.msra.mxu0 %vm94_vm0, %v85_v1 }
  0x13   :  { %151 = vrot.lane.b32.xlu0 %v2870_v2, %s2701_s8  ;;  %1960 = vmatmul.msk.f32.vlgmr.msra.gmra.mxu0 %vm90_vm1, %v2870_v2 }
  0x14   :  { %32 = vsyncpa [#allocation4], 0  ;;  %s3637_s4 = sld [smem:[#allocation9_spill]]  ;;  %v2702_v4 = vmov 10   ;;  %v2703_v5 = vmov 9   ;;  %v2704_v6 = vmov 8  }
  0x15   :  { %2537 = vset.pattern.permute.xlu1 %v2702_v4  ;;  %2536 = vset.pattern.permute.xlu0 %v2703_v5  ;;  %s3638_s5 = sld [smem:[#allocation8_spill]]  ;;  %vm125_vm2 = vcmask 64512   ;;  %v2705_v13 = vmov 11   ;;  %v2706_v14 = vmov 13   ;;  %v2707_v17 = vmov 14   ;;  %s2709_s1 = smov 64  }
  0x16   :  { %2539 = vset.pattern.permute.xlu2 %v2704_v6  ;;  %s3639_s2 = sld [smem:[#allocation13_spill]]  ;;  %v2708_v18 = vmov 15   ;;  %vm324_vm3 = vcmask 261120   ;;  %s2710_s8 = smov 32   ;;  %v2712_v30 = vmov 12   ;;  %v2713_v33 = vmov 0  }
  0x17   :  { %s3640_s26 = sld [smem:[#allocation10_spill]]  ;;  %s2711_s24 = smov 96   ;;  %v2714_v35 = vmov 3   ;;  %v2715_v36 = vmov 6   ;;  %v2716_v37 = vmov 18   ;;  %v2717_v41 = vmov 21  }
  0x18   :  { %s3641_s28 = sld [smem:[#allocation11_spill]]  ;;  %v2718_v47 = vmov 2   ;;  %v2719_v53 = vmov 1   ;;  %vm326_vm4 = vcmask 523264   ;;  %vm328_vm5 = vcmask 785408   ;;  %s1950_s9 = sshll.u32 %s3620_s25, 4  ;;  %s1951_s9 = int_to_ptr.hbm [resolvable:$true] %s1950_s9 }
  0x19   :  { %vm872_vm6 = vcmask 195584   ;;  %vm1019_vm7 = vcmask 7168   ;;  %vm1021_vm8 = vcmask 15360   ;;  %vm1023_vm9 = vcmask 23552  }
  0x1a   :  { %v120_v3 = vld [vmem:[%s3637_s4] sm:$0xff]  ;;  %s3643_s4 = sld [smem:[#allocation15_spill]]  ;;  %vm1025_vm10 = vcmask 31744   ;;  %vm1028_vm11 = vcmask 39936  }
  0x1b   :  { %144 = vmatpush.msra.mxu2 %v120_v3  ;;  %v2660_v7 = vld [vmem:[%s3638_s5] ss:$0 sm:$0xff] }
  0x1c   :  { %v2449_v15 = vld [vmem:[%s3639_s2 + $0x8] sm:$0xff]  ;;  %v2448_v16 = vld [vmem:[%s3639_s2] sm:$0xff]  ;;  %s3642_s2 = sld [smem:[#allocation12_spill]] }
  0x1d   :  { %496 = vmatpush.bf16.msrb.mxu2 %v2449_v15  ;;  %v2661_v19 = vld [vmem:[%s3640_s26] ss:$0 sm:$0xff] }
  0x1e   :  { %v2423_v34 = vld [vmem:[%s3641_s28 + $0xb8] sm:$0xff]  ;;  %v2422_v38 = vld [vmem:[%s3641_s28 + $0xb0] sm:$0xff]  ;;  %v2421_v39 = vld [vmem:[%s3641_s28 + $0xa8] sm:$0xff] }
  0x1f   :  { %817 = vmatpush.bf16.msra.mxu1 %v2423_v34  ;;  %v2420_v40 = vld [vmem:[%s3641_s28 + $0xa0] sm:$0xff]  ;;  %v2419_v42 = vld [vmem:[%s3641_s28 + $0x98] sm:$0xff]  ;;  %v2418_v43 = vld [vmem:[%s3641_s28 + $0x90] sm:$0xff] }
  0x20   :  { %v2417_v44 = vld [vmem:[%s3641_s28 + $0x88] sm:$0xff]  ;;  %v2416_v46 = vld [vmem:[%s3641_s28 + $0x80] sm:$0xff]  ;;  %v2452_v57 = vld [vmem:[%s3643_s4 + $0x14] sm:$0xf] }
  0x21   :  { %497 = vmatpush.bf16.msrb.mxu2 %v2448_v16  ;;  %v2177_v58 = vld [vmem:[%s3643_s4 + $0x18] sm:$0xf0]  ;;  %v2450_v1 = vld [vmem:[%s3643_s4 + $0x4] sm:$0xf]  ;;  %v2169_v3 = vld [vmem:[%s3643_s4 + $0x8] sm:$0xf0] }
  0x22   :  { %v871_v48 = vld [vmem:[%s3642_s2 + $0x10] sm:$0xff]  ;;  %v870_v50 = vld [vmem:[%s3642_s2 + $0x8] sm:$0xff]  ;;  %v869_v51 = vld [vmem:[%s3642_s2] sm:$0xff]  ;;  %v2180_v63 = vor.u32 %v2452_v57, %v2177_v58  ;;  %v2721_v16 = vmov 17  }
  0x23   :  { %818 = vmatpush.bf16.msra.mxu1 %v2422_v38  ;;  %v1061_v15 = vld [vmem:[%s3608_s13] sm:$0x3f]  ;;  %v2427_v34 = vld [vmem:[%s3641_s28 + $0xd8] sm:$0xff]  ;;  %v2426_v38 = vld [vmem:[%s3641_s28 + $0xd0] sm:$0xff] }
  0x27   :  { %819 = vmatpush.bf16.msra.mxu1 %v2421_v39  ;;  %v2425_v39 = vld [vmem:[%s3641_s28 + $0xc8] sm:$0xff] }
  0x2b   :  { %820 = vmatpush.bf16.msra.mxu1 %v2420_v40  ;;  %v2424_v40 = vld [vmem:[%s3641_s28 + $0xc0] sm:$0xff] }
  0x2f   :  { %821 = vmatpush.bf16.msra.mxu1 %v2419_v42 }
  0x33   :  { %822 = vmatpush.bf16.msra.mxu1 %v2418_v43  ;;  %v2728_v43 = vmov 16  }
  0x37   :  { %823 = vmatpush.bf16.msra.mxu1 %v2417_v44 }
  0x3b   :  { %824 = vmatpush.bf16.msra.mxu1 %v2416_v46  ;;  %v2175_v46 = vld [vmem:[%s3643_s4 + $0x10] sm:$0xf] }
  0x3f   :  { %888 = vmatpush.msrb.mxu1 %v871_v48 }
  0x41   :  { %889 = vmatpush.msrb.mxu1 %v870_v50  ;;  %v2167_v50 = vld [vmem:[%s3643_s4] sm:$0xf] }
  0x43   :  { %890 = vmatpush.msrb.mxu1 %v869_v51  ;;  %v2451_v51 = vld [vmem:[%s3643_s4 + $0x4] sm:$0xf0] }
  0x85   :  { %v2885_v10 = vpop.permute.xlu0 %151 }
  0x90   :  { %v115_v8 = vpop.f32.mrf.mxu0 }
  0x91   :  { %v116_v9 = vadd.f32 %v2660_v7, %v115_v8 }
  0x93   :  { %v1961_v11 = vclamps-f32 %v116_v9, 1.0  ;;  %v2720_v9 = vmov 5  }
  0x95   :  { %v2889_v12 = vsel %vm125_vm2, %v1961_v11, %v2885_v10  ;;  %1962 = vmatmul.msk.f32.vlgmr.msra.gmra.mxu2 %vm125_vm2, %v1961_v11 }
  0x96   :  { %197 = vperm.xlu2 %2539, %v2889_v12   ;;  %207 = vperm.xlu1 %2537, %v2889_v12  }
  0x97   :  { %202 = vperm.xlu0 %2536, %v2889_v12  }
  0x9e   :  { %2538 = vset.pattern.permute.xlu1 %v2705_v13  ;;  %2542 = vset.pattern.permute.xlu2 %v2708_v18 }
  0x9f   :  { %2540 = vset.pattern.permute.xlu0 %v2706_v14  ;;  %212 = vperm.xlu1 %2538, %v2889_v12  }
  0xa0   :  { %222 = vperm.xlu0 %2540, %v2889_v12  }
  0xa7   :  { %2541 = vset.pattern.permute.xlu1 %v2707_v17 }
  0xa8   :  { %2545 = vset.pattern.permute.xlu0 %v2719_v53 }
  0xf0   :  { %v198_v45 = vpop.permute.xlu2 %197 }
 0x108   :  { %v208_v22 = vpop.permute.xlu1 %207 }
 0x109   :  { %v203_v24 = vpop.permute.xlu0 %202 }
 0x111   :  { %v213_v28 = vpop.permute.xlu1 %212 }
 0x112   :  { %v223_v31 = vpop.permute.xlu0 %222 }
 0x118   :  { %v146_v20 = vpop.f32.mrf.mxu2 }
 0x119   :  { %v147_v21 = vadd.f32 %v2661_v19, %v146_v20  ;;  %v2431_v19 = vld [vmem:[%s3641_s28 + $0xf8] sm:$0xff] }
 0x11a   :  { %830 = vmatpush.bf16.msra.mxu2 %v2431_v19 }
 0x11b   :  { %v2910_v23 = vmax.f32 %v147_v21, 0.0  ;;  %v2430_v21 = vld [vmem:[%s3641_s28 + $0xf0] sm:$0xff] }
 0x11d   :  { %v210_v25 = vmul.f32 %v208_v22, %v2910_v23  ;;  %v205_v26 = vmul.f32 %v203_v24, %v2910_v23  ;;  %v2916_v27 = vpack.c.bf16 %v2910_v23, %v2910_v23  ;;  %v215_v29 = vmul.f32 %v213_v28, %v2910_v23 }
 0x11e   :  { %v225_v32 = vmul.f32 %v223_v31, %v2910_v23  ;;  %v200_v56 = vmul.f32 %v198_v45, %v2910_v23  ;;  %v2722_v22 = vmov 7   ;;  %v2723_v24 = vmov 19   ;;  %831 = vmatpush.bf16.msra.mxu2 %v2430_v21 }
 0x11f   :  { %305 = vrot.lane.b32.xlu1 %v210_v25, %s2709_s1  ;;  %301 = vrot.lane.b32.xlu2 %v205_v26, %s2710_s8  ;;  %v2429_v25 = vld [vmem:[%s3641_s28 + $0xe8] sm:$0xff]  ;;  %v2724_v26 = vmov 22   ;;  %v2725_v28 = vmov 23   ;;  %v2727_v31 = vmov 20  }
 0x120   :  { %1971 = vmatmul.msk.bf16.vlgmr.msrb.gmra.mxu2 %vm324_vm3, %v2916_v27 }
 0x122   :  { %832 = vmatpush.bf16.msra.mxu2 %v2429_v25 }
 0x127   :  { %227 = vperm.xlu1 %2541, %v2889_v12   ;;  %309 = vrot.lane.b32.xlu2 %v215_v29, %s2711_s24  ;;  %v2726_v29 = vmov 4  }
 0x12f   :  { %2543 = vset.pattern.permute.xlu1 %v2712_v30  ;;  %232 = vperm.xlu2 %2542, %v2889_v12  }
 0x130   :  { %217 = vperm.xlu1 %2543, %v2889_v12  }
 0x137   :  { %313 = vrot.lane.b32.xlu2 %v225_v32, %s2710_s8  ;;  %v2428_v32 = vld [vmem:[%s3641_s28 + $0xe0] sm:$0xff] }
 0x138   :  { %2544 = vset.pattern.permute.xlu2 %v2713_v33  ;;  %2546 = vset.pattern.permute.xlu1 %v2718_v47 }
 0x139   :  { %833 = vmatpush.bf16.msra.mxu2 %v2428_v32 }
 0x13d   :  { %834 = vmatpush.bf16.msra.mxu2 %v2427_v34 }
 0x13f   :  { %157 = vperm.xlu2 %2544, %v2889_v12  }
 0x141   :  { %835 = vmatpush.bf16.msra.mxu2 %v2426_v38 }
 0x145   :  { %836 = vmatpush.bf16.msra.mxu2 %v2425_v39 }
 0x147   :  { %2547 = vset.pattern.permute.xlu2 %v2714_v35 }
 0x148   :  { %172 = vperm.xlu2 %2547, %v2889_v12  }
 0x149   :  { %837 = vmatpush.bf16.msra.mxu2 %v2424_v40 }
 0x150   :  { %2549 = vset.pattern.permute.xlu2 %v2715_v36 }
 0x151   :  { %187 = vperm.xlu2 %2549, %v2889_v12  }
 0x159   :  { %2552 = vset.pattern.permute.xlu2 %v2716_v37 }
 0x15a   :  { %247 = vperm.xlu2 %2552, %v2889_v12  }
 0x162   :  { %2554 = vset.pattern.permute.xlu2 %v2717_v41 }
 0x163   :  { %262 = vperm.xlu2 %2554, %v2889_v12  }
 0x16b   :  { %2591 = vset.pattern.permute.xlu2 %v2702_v4  ;;  %v2172_v4 = vor.u32 %v2450_v1, %v2169_v3  ;;  %v961_v3 = vld [vmem:[%s3606_s11 + $0x18] sm:$0xff] }
 0x179   :  { %v302_v49 = vpop.permute.xlu2 %301 }
 0x17a   :  { %v333_v59 = vsel %vm324_vm3, %v200_v56, %v302_v49 }
 0x181   :  { %v310_v52 = vpop.permute.xlu2 %309 }
 0x189   :  { %v233_v54 = vpop.permute.xlu2 %232 }
 0x18a   :  { %v235_v55 = vmul.f32 %v233_v54, %v2910_v23 }
 0x18c   :  { %321 = vrot.lane.b32.xlu1 %v235_v55, %s2711_s24 }
 0x191   :  { %v306_v60 = vpop.permute.xlu1 %305 }
 0x192   :  { %v334_v61 = vsel %vm326_vm4, %v333_v59, %v306_v60 }
 0x193   :  { %v335_v62 = vsel %vm328_vm5, %v334_v61, %v310_v52  ;;  %v2168_v52 = vor.u32 %v2451_v51, %v2167_v50 }
 0x194   :  { %167 = vperm.xlu1 %2546, %v2889_v12   ;;  %v371_v0 = vpack.c.bf16 %v335_v62, %v335_v62 }
 0x196   :  { %825 = vmatmul.bf16.vlgmr.msra.gmra.mxu1 %v371_v0 }
 0x197   :  { %951 = vmatpush.bf16.msra.mxu1 %v2180_v63 }
 0x199   :  { %v228_v7 = vpop.permute.xlu1 %227 }
 0x19a   :  { %v230_v8 = vmul.f32 %v228_v7, %v2910_v23  ;;  %v960_v7 = vld [vmem:[%s3606_s11 + $0x10] sm:$0xff] }
 0x19b   :  { %952 = vmatpush.bf16.msra.mxu1 %v2172_v4 }
 0x19c   :  { %317 = vrot.lane.b32.xlu0 %v230_v8, %s2709_s1  ;;  %2548 = vset.pattern.permute.xlu1 %v2720_v9  ;;  %v959_v8 = vld [vmem:[%s3606_s11 + $0x8] sm:$0xff] }
 0x19d   :  { %182 = vperm.xlu1 %2548, %v2889_v12  }
 0x1a2   :  { %v218_v44 = vpop.permute.xlu1 %217 }
 0x1a3   :  { %v2999_v11 = vpop.f32.mrf.mxu2  ;;  %v220_v59 = vmul.f32 %v218_v44, %v2910_v23  ;;  %v1091_v44 = vld [vmem:[%s3610_s15] sm:$0xff] }
 0x1a4   :  { %162 = vperm.xlu0 %2545, %v2889_v12  }
 0x1a5   :  { %2551 = vset.pattern.permute.xlu1 %v2721_v16 }
 0x1a6   :  { %242 = vperm.xlu1 %2551, %v2889_v12   ;;  %2164 = vmatmul.msk.f32.vlgmr.msrb.gmra.mxu1 %vm872_vm6, %v2889_v12 }
 0x1a7   :  { %2184 = vmatpush.msk.msrb.mxu1 %vm94_vm0, %v1061_v15  ;;  %vm1940_vm0 = vcmask 56320  }
 0x1ab   :  { %v501_v20 = vpop.f32.mrf.mxu2 }
 0x1ac   :  { %2550 = vset.pattern.permute.xlu0 %v2722_v22 }
 0x1ad   :  { %192 = vperm.xlu0 %2550, %v2889_v12  }
 0x1ae   :  { %2553 = vset.pattern.permute.xlu1 %v2723_v24  ;;  %2182 = vmatmul.msk.bf16.vlgmr.msra.gmra.mxu1 %vm324_vm3, %v2916_v27 }
 0x1af   :  { %252 = vperm.xlu1 %2553, %v2889_v12  }
 0x1b5   :  { %2555 = vset.pattern.permute.xlu0 %v2724_v26 }
 0x1b6   :  { %267 = vperm.xlu0 %2555, %v2889_v12  }
 0x1b7   :  { %2556 = vset.pattern.permute.xlu1 %v2725_v28 }
 0x1b8   :  { %272 = vperm.xlu1 %2556, %v2889_v12  }
 0x1be   :  { %2557 = vset.pattern.permute.xlu0 %v2726_v29  ;;  %2185 = vmatmul.msk.f32.vlgmr.msrb.gmra.mxu1 %vm90_vm1, %v2870_v2  ;;  %v314_v2 = vpop.permute.xlu2 %313 }
 0x1bf   :  { %177 = vperm.xlu0 %2557, %v2889_v12   ;;  %v336_v61 = vsel %vm324_vm3, %v220_v59, %v314_v2 }
 0x1c0   :  { %2568 = vset.pattern.permute.xlu1 %v2728_v43 }
 0x1c6   :  { %v3051_v42 = vpop.permute.xlu2 %157 }
 0x1c7   :  { %2589 = vset.pattern.permute.xlu0 %v2727_v31 }
 0x1c8   :  { %257 = vperm.xlu0 %2589, %v2889_v12  }
 0x1ce   :  { %v173_v45 = vpop.permute.xlu2 %172 }
 0x1cf   :  { %v175_v38 = vmul.f32 %v173_v45, %v2910_v23 }
 0x1d0   :  { %2594 = vset.pattern.permute.xlu0 %v2718_v47  ;;  %v2453_v47 = vld [vmem:[%s3643_s4 + $0x14] sm:$0xf0]  ;;  %s3644_s4 = sld [smem:[#allocation14_spill]] }
 0x1d1   :  { %v2176_v48 = vor.u32 %v2453_v47, %v2175_v46 }
 0x1d3   :  { %938 = vmatpush.bf16.msrb.mxu2 %v2176_v48 }
 0x1d6   :  { %v188_v54 = vpop.permute.xlu2 %187 }
 0x1d7   :  { %939 = vmatpush.bf16.msrb.mxu2 %v2168_v52  ;;  %v190_v56 = vmul.f32 %v188_v54, %v2910_v23 }
 0x1de   :  { %v248_v32 = vpop.permute.xlu2 %247 }
 0x1df   :  { %v250_v50 = vmul.f32 %v248_v32, %v2910_v23 }
 0x1fe   :  { %v322_v49 = vpop.permute.xlu1 %321 }
 0x206   :  { %v168_v55 = vpop.permute.xlu1 %167 }
 0x207   :  { %v170_v57 = vmul.f32 %v168_v55, %v2910_v23 }
 0x209   :  { %v2563_v58 = vpack.i.bf16 %v190_v56, %v170_v57 }
 0x20b   :  { %2564 = vrot.lane.b32.xlu1 %v2563_v58, %s2709_s1 }
 0x20e   :  { %v318_v60 = vpop.permute.xlu0 %317 }
 0x20f   :  { %v337_v62 = vsel %vm326_vm4, %v336_v61, %v318_v60  ;;  %v183_v63 = vpop.permute.xlu1 %182  ;;  %v2662_v60 = vld [vmem:[%s3609_s14] ss:$0 sm:$0xff] }
 0x210   :  { %v338_v0 = vsel %vm328_vm5, %v337_v62, %v322_v49  ;;  %v185_v19 = vmul.f32 %v183_v63, %v2910_v23 }
 0x211   :  { %v372_v1 = vpack.c.bf16 %v338_v0, %v338_v0 }
 0x213   :  { %237 = vperm.xlu1 %2568, %v2889_v12   ;;  %v3077_v4 = vpop.f32.mrf.mxu1  ;;  %838 = vmatmul.bf16.vlgmr.msra.gmra.mxu2 %v372_v1  ;;  %v958_v12 = vld [vmem:[%s3606_s11] sm:$0xff]  ;;  %v2407_v1 = vld [vmem:[%s3641_s28 + $0x38] sm:$0xff] }
 0x214   :  { %981 = vmatpush.msra.mxu2 %v961_v3  ;;  %v2415_v3 = vld [vmem:[%s3641_s28 + $0x78] sm:$0xff]  ;;  %791 = vmatpush.bf16.msra.mxu3 %v2407_v1 }
 0x215   :  { %804 = vmatpush.bf16.msrb.mxu0 %v2415_v3 }
 0x216   :  { %v163_v15 = vpop.permute.xlu0 %162  ;;  %982 = vmatpush.msra.mxu2 %v960_v7  ;;  %v2414_v7 = vld [vmem:[%s3641_s28 + $0x70] sm:$0xff] }
 0x217   :  { %v165_v20 = vmul.f32 %v163_v15, %v2910_v23  ;;  %v2403_v15 = vld [vmem:[%s3641_s28 + $0x18] sm:$0xff] }
 0x218   :  { %v243_v21 = vpop.permute.xlu1 %242  ;;  %983 = vmatpush.msra.mxu2 %v959_v8  ;;  %v2405_v8 = vld [vmem:[%s3641_s28 + $0x28] sm:$0xff] }
 0x219   :  { %v2558_v25 = vpack.i.bf16 %v185_v19, %v165_v20  ;;  %v245_v48 = vmul.f32 %v243_v21, %v2910_v23  ;;  %805 = vmatpush.bf16.msrb.mxu0 %v2414_v7  ;;  %v2401_v19 = vld [vmem:[%s3641_s28 + $0x8] sm:$0xff]  ;;  %v2439_v20 = vld [vmem:[%s3641_s28 + $0x138] sm:$0xff] }
 0x21a   :  { %984 = vmatpush.msra.mxu2 %v958_v12  ;;  %v2447_v12 = vld [vmem:[%s3641_s28 + $0x178] sm:$0xff]  ;;  %v2437_v21 = vld [vmem:[%s3641_s28 + $0x128] sm:$0xff] }
 0x21b   :  { %2559 = vrot.lane.b32.xlu2 %v2558_v25, %s2710_s8  ;;  %v828_v34 = vpop.f32.mrf.mxu1  ;;  %2590 = vset.pattern.permute.xlu1 %v2703_v5  ;;  %v263_v5 = vpop.permute.xlu2 %262  ;;  %v2445_v25 = vld [vmem:[%s3641_s28 + $0x168] sm:$0xff] }
 0x21c   :  { %v265_v45 = vmul.f32 %v263_v5, %v2910_v23  ;;  %v2435_v34 = vld [vmem:[%s3641_s28 + $0x118] sm:$0xff] }
 0x21e   :  { %v2574_v52 = vpack.i.bf16 %v265_v45, %v245_v48 }
 0x21f   :  { %v193_v2 = vpop.permute.xlu0 %192 }
 0x220   :  { %v195_v39 = vmul.f32 %v193_v2, %v2910_v23  ;;  %v2443_v2 = vld [vmem:[%s3641_s28 + $0x158] sm:$0xff] }
 0x221   :  { %v253_v40 = vpop.permute.xlu1 %252 }
 0x222   :  { %v2569_v46 = vpack.i.bf16 %v195_v39, %v175_v38  ;;  %v255_v57 = vmul.f32 %v253_v40, %v2910_v23  ;;  %v2434_v39 = vld [vmem:[%s3641_s28 + $0x110] sm:$0xff] }
 0x223   :  { %v3097_v47 = vpop.f32.mrf.mxu1  ;;  %2181 = vmatmul.msk.bf16.vlgmr.msrb.gmra.mxu2 %vm324_vm3, %v2916_v27  ;;  %v2442_v40 = vld [vmem:[%s3641_s28 + $0x150] sm:$0xff] }
 0x224   :  { %2570 = vrot.lane.b32.xlu2 %v2569_v46, %s2711_s24  ;;  %1114 = vmatpush.msrb.mxu2 %v1091_v44 }
 0x228   :  { %v268_v49 = vpop.permute.xlu0 %267 }
 0x229   :  { %v270_v51 = vmul.f32 %v268_v49, %v2910_v23 }
 0x22a   :  { %v273_v55 = vpop.permute.xlu1 %272 }
 0x22b   :  { %v2579_v54 = vpack.i.bf16 %v270_v51, %v250_v50  ;;  %v3106_v56 = vpop.f32.mrf.mxu1  ;;  %v275_v27 = vmul.f32 %v273_v55, %v2910_v23  ;;  %v2433_v55 = vld [vmem:[%s3641_s28 + $0x108] sm:$0xff] }
 0x22c   :  { %2575 = vrot.lane.b32.xlu2 %v2574_v52, %s2710_s8 }
 0x22d   :  { %2580 = vrot.lane.b32.xlu1 %v2579_v54, %s2709_s1  ;;  %v2584_v58 = vpack.i.bf16 %v275_v27, %v255_v57 }
 0x231   :  { %v178_v38 = vpop.permute.xlu0 %177 }
 0x233   :  { %v956_v59 = vpop.f32.mrf.mxu1  ;;  %2183 = vmatmul.msk.f32.vlgmr.msra.gmra.mxu2 %vm324_vm3, %v2910_v23 }
 0x234   :  { %2585 = vrot.lane.b32.xlu2 %v2584_v58, %s2711_s24 }
 0x23b   :  { %v1086_v61 = vpop.f32.mrf.mxu1 }
 0x23c   :  { %v1087_v62 = vadd.f32 %v2662_v60, %v1086_v61 }
 0x23e   :  { %v2186_v63 = vclamps-f32 %v1087_v62, 1.0  ;;  %v2432_v62 = vld [vmem:[%s3641_s28 + $0x100] sm:$0xff] }
 0x240   :  { %v3120_v0 = vsel %vm125_vm2, %v2186_v63, %v2885_v10  ;;  %2187 = vmatmul.msk.f32.vlgmr.msrb.gmra.mxu2 %vm125_vm2, %v2186_v63  ;;  %v2406_v10 = vld [vmem:[%s3641_s28 + $0x30] sm:$0xff] }
 0x241   :  { %1134 = vperm.xlu0 %2594, %v3120_v0   ;;  %1174 = vperm.xlu2 %2591, %v3120_v0  }
 0x242   :  { %1169 = vperm.xlu1 %2590, %v3120_v0   ;;  %792 = vmatpush.bf16.msra.mxu3 %v2406_v10  ;;  %v258_v10 = vpop.permute.xlu0 %257 }
 0x246   :  { %793 = vmatpush.bf16.msra.mxu3 %v2405_v8 }
 0x249   :  { %2599 = vset.pattern.permute.xlu0 %v2707_v17  ;;  %2593 = vset.pattern.permute.xlu2 %v2705_v13  ;;  %v2413_v17 = vld [vmem:[%s3641_s28 + $0x68] sm:$0xff]  ;;  %v2404_v13 = vld [vmem:[%s3641_s28 + $0x20] sm:$0xff] }
 0x24a   :  { %2592 = vset.pattern.permute.xlu1 %v2719_v53  ;;  %1194 = vperm.xlu0 %2599, %v3120_v0   ;;  %v2412_v53 = vld [vmem:[%s3641_s28 + $0x60] sm:$0xff] }
 0x24b   :  { %1179 = vperm.xlu2 %2593, %v3120_v0   ;;  %1129 = vperm.xlu1 %2592, %v3120_v0  }
 0x24c   :  { %806 = vmatpush.bf16.msrb.mxu0 %v2413_v17  ;;  %794 = vmatpush.bf16.msra.mxu3 %v2404_v13 }
 0x250   :  { %807 = vmatpush.bf16.msrb.mxu0 %v2412_v53  ;;  %795 = vmatpush.bf16.msra.mxu3 %v2403_v15 }
 0x252   :  { %2604 = vset.pattern.permute.xlu0 %v2723_v24  ;;  %v2411_v24 = vld [vmem:[%s3641_s28 + $0x58] sm:$0xff] }
 0x253   :  { %2596 = vset.pattern.permute.xlu2 %v2720_v9  ;;  %2595 = vset.pattern.permute.xlu1 %v2714_v35  ;;  %v2402_v35 = vld [vmem:[%s3641_s28 + $0x10] sm:$0xff] }
 0x254   :  { %1219 = vperm.xlu0 %2604, %v3120_v0   ;;  %1149 = vperm.xlu2 %2596, %v3120_v0   ;;  %v2410_v9 = vld [vmem:[%s3641_s28 + $0x50] sm:$0xff] }
 0x255   :  { %1139 = vperm.xlu1 %2595, %v3120_v0   ;;  %808 = vmatpush.bf16.msrb.mxu0 %v2411_v24 }
 0x256   :  { %796 = vmatpush.bf16.msra.mxu3 %v2402_v35 }
 0x259   :  { %809 = vmatpush.bf16.msrb.mxu0 %v2410_v9 }
 0x25a   :  { %797 = vmatpush.bf16.msra.mxu3 %v2401_v19 }
 0x25c   :  { %2609 = vset.pattern.permute.xlu0 %v2713_v33  ;;  %2598 = vset.pattern.permute.xlu2 %v2715_v36  ;;  %v2409_v33 = vld [vmem:[%s3641_s28 + $0x48] sm:$0xff]  ;;  %v2408_v36 = vld [vmem:[%s3641_s28 + $0x40] sm:$0xff] }
 0x25d   :  { %2597 = vset.pattern.permute.xlu1 %v2706_v14  ;;  %1124 = vperm.xlu0 %2609, %v3120_v0   ;;  %v2400_v14 = vld [vmem:[%s3641_s28] sm:$0xff] }
 0x25e   :  { %1154 = vperm.xlu2 %2598, %v3120_v0   ;;  %1189 = vperm.xlu1 %2597, %v3120_v0  }
 0x25f   :  { %810 = vmatpush.bf16.msrb.mxu0 %v2409_v33  ;;  %798 = vmatpush.bf16.msra.mxu3 %v2400_v14 }
 0x263   :  { %811 = vmatpush.bf16.msrb.mxu0 %v2408_v36  ;;  %843 = vmatpush.bf16.msrb.mxu3 %v2439_v20 }
 0x265   :  { %2659 = vset.pattern.permute.xlu0 %v2725_v28 }
 0x266   :  { %2601 = vset.pattern.permute.xlu2 %v2708_v18  ;;  %2600 = vset.pattern.permute.xlu1 %v2722_v22  ;;  %v2438_v18 = vld [vmem:[%s3641_s28 + $0x130] sm:$0xff] }
 0x267   :  { %1199 = vperm.xlu2 %2601, %v3120_v0   ;;  %1159 = vperm.xlu1 %2600, %v3120_v0   ;;  %v2446_v22 = vld [vmem:[%s3641_s28 + $0x170] sm:$0xff] }
 0x268   :  { %856 = vmatpush.bf16.msra.mxu0 %v2447_v12  ;;  %844 = vmatpush.bf16.msrb.mxu3 %v2438_v18 }
 0x26c   :  { %857 = vmatpush.bf16.msra.mxu0 %v2446_v22  ;;  %845 = vmatpush.bf16.msrb.mxu3 %v2437_v21  ;;  %v2502_v22 = vld [vmem:[%s3614_s19] sm:$0xff] }
 0x26f   :  { %2603 = vset.pattern.permute.xlu2 %v2716_v37  ;;  %2602 = vset.pattern.permute.xlu1 %v2721_v16  ;;  %v2436_v37 = vld [vmem:[%s3641_s28 + $0x120] sm:$0xff] }
 0x270   :  { %1214 = vperm.xlu2 %2603, %v3120_v0   ;;  %1209 = vperm.xlu1 %2602, %v3120_v0   ;;  %v2444_v16 = vld [vmem:[%s3641_s28 + $0x160] sm:$0xff] }
 0x271   :  { %858 = vmatpush.bf16.msra.mxu0 %v2445_v25  ;;  %846 = vmatpush.bf16.msrb.mxu3 %v2436_v37 }
 0x275   :  { %v2560_v32 = vpop.permute.xlu2 %2559  ;;  %859 = vmatpush.bf16.msra.mxu0 %v2444_v16  ;;  %847 = vmatpush.bf16.msrb.mxu3 %v2435_v34 }
 0x276   :  { %v2562_v44 = vunpack.i.h.bf16 %v2560_v32  ;;  %v2561_v46 = vunpack.i.l.bf16 %v2560_v32 }
 0x278   :  { %2606 = vset.pattern.permute.xlu2 %v2724_v26  ;;  %2605 = vset.pattern.permute.xlu1 %v2717_v41  ;;  %v160_v41 = vmul.f32 %v3051_v42, %v2910_v23  ;;  %v180_v26 = vmul.f32 %v178_v38, %v2910_v23  ;;  %v2441_v42 = vld [vmem:[%s3641_s28 + $0x148] sm:$0xff]  ;;  %v2664_v38 = vld [vmem:[%s3611_s16] ss:$0 sm:$0xff] }
 0x279   :  { %1234 = vperm.xlu2 %2606, %v3120_v0   ;;  %1229 = vperm.xlu1 %2605, %v3120_v0  }
 0x27a   :  { %860 = vmatpush.bf16.msra.mxu0 %v2443_v2  ;;  %848 = vmatpush.bf16.msrb.mxu3 %v2434_v39  ;;  %v330_v50 = vsel %vm324_vm3, %v180_v26, %v2562_v44  ;;  %v325_v54 = vsel %vm324_vm3, %v160_v41, %v2561_v46 }
 0x27d   :  { %v2565_v5 = vpop.permute.xlu1 %2564 }
 0x27e   :  { %v2567_v48 = vunpack.i.h.bf16 %v2565_v5  ;;  %v2566_v45 = vunpack.i.l.bf16 %v2565_v5  ;;  %v2571_v49 = vpop.permute.xlu2 %2570  ;;  %861 = vmatpush.bf16.msra.mxu0 %v2442_v40  ;;  %849 = vmatpush.bf16.msrb.mxu3 %v2433_v55 }
 0x27f   :  { %v2573_v51 = vunpack.i.h.bf16 %v2571_v49  ;;  %v2572_v52 = vunpack.i.l.bf16 %v2571_v49 }
 0x280   :  { %v331_v27 = vsel %vm326_vm4, %v330_v50, %v2567_v48  ;;  %v327_v57 = vsel %vm326_vm4, %v325_v54, %v2566_v45 }
 0x281   :  { %2608 = vset.pattern.permute.xlu2 %v2704_v6  ;;  %2607 = vset.pattern.permute.xlu1 %v2725_v28  ;;  %v329_v58 = vsel %vm328_vm5, %v327_v57, %v2572_v52  ;;  %v332_v59 = vsel %vm328_vm5, %v331_v27, %v2573_v51  ;;  %v2440_v6 = vld [vmem:[%s3641_s28 + $0x140] sm:$0xff] }
 0x282   :  { %1164 = vperm.xlu2 %2608, %v3120_v0   ;;  %1239 = vperm.xlu1 %2607, %v3120_v0   ;;  %v369_v60 = vpack.c.bf16 %v329_v58, %v329_v58  ;;  %v370_v61 = vpack.c.bf16 %v332_v59, %v332_v59 }
 0x283   :  { %862 = vmatpush.bf16.msra.mxu0 %v2441_v42  ;;  %850 = vmatpush.bf16.msrb.mxu3 %v2432_v62 }
 0x284   :  { %799 = vmatmul.bf16.vlgmr.msra.gmra.mxu3 %v369_v60  ;;  %812 = vmatmul.bf16.vlgmr.msrb.gmra.mxu0 %v370_v61 }
 0x285   :  { %v238_v1 = vpop.permute.xlu1 %237 }
 0x286   :  { %v2576_v28 = vpop.permute.xlu2 %2575  ;;  %v240_v7 = vmul.f32 %v238_v1, %v2910_v23 }
 0x287   :  { %863 = vmatpush.bf16.msra.mxu0 %v2440_v6  ;;  %v2578_v8 = vunpack.i.h.bf16 %v2576_v28 }
 0x28a   :  { %2611 = vset.pattern.permute.xlu2 %v2712_v30  ;;  %2610 = vset.pattern.permute.xlu1 %v2726_v29  ;;  %v2577_v30 = vunpack.i.l.bf16 %v2576_v28  ;;  %v260_v29 = vmul.f32 %v258_v10, %v2910_v23  ;;  %v2503_v23 = vld [vmem:[%s3614_s19 + $0x8] sm:$0xff] }
 0x28b   :  { %1184 = vperm.xlu2 %2611, %v3120_v0   ;;  %1144 = vperm.xlu1 %2610, %v3120_v0  }
 0x28c   :  { %1460 = vmatpush.bf16.msra.mxu3 %v2503_v23 }
 0x28e   :  { %v2586_v3 = vpop.permute.xlu2 %2585 }
 0x28f   :  { %v2588_v35 = vunpack.i.h.bf16 %v2586_v3  ;;  %v2587_v9 = vunpack.i.l.bf16 %v2586_v3 }
 0x290   :  { %1461 = vmatpush.bf16.msra.mxu3 %v2502_v22  ;;  %v2477_v22 = vld [vmem:[%s3612_s17 + $0xb8] sm:$0xff] }
 0x291   :  { %1781 = vmatpush.bf16.msra.mxu2 %v2477_v22  ;;  %v1834_v22 = vld [vmem:[%s3613_s18 + $0x8] sm:$0xff] }
 0x293   :  { %2643 = vset.pattern.permute.xlu2 %v2727_v31  ;;  %2642 = vset.pattern.permute.xlu1 %v2728_v43  ;;  %v366_v31 = vsel %vm324_vm3, %v260_v29, %v2578_v8  ;;  %v363_v43 = vsel %vm324_vm3, %v240_v7, %v2577_v30 }
 0x296   :  { %v3272_v63 = vpop.f32.mrf.mxu2 }
 0x29b   :  { %v1175_v53 = vpop.permute.xlu2 %1174 }
 0x29e   :  { %v841_v17 = vpop.f32.mrf.mxu2 }
 0x29f   :  { %v2581_v13 = vpop.permute.xlu1 %2580 }
 0x2a0   :  { %v2583_v15 = vunpack.i.h.bf16 %v2581_v13  ;;  %v2582_v24 = vunpack.i.l.bf16 %v2581_v13 }
 0x2a2   :  { %v364_v19 = vsel %vm326_vm4, %v363_v43, %v2582_v24  ;;  %v367_v33 = vsel %vm326_vm4, %v366_v31, %v2583_v15 }
 0x2a3   :  { %v365_v14 = vsel %vm328_vm5, %v364_v19, %v2587_v9  ;;  %v368_v36 = vsel %vm328_vm5, %v367_v33, %v2588_v35 }
 0x2a4   :  { %v373_v20 = vpack.c.bf16 %v365_v14, %v365_v14  ;;  %v374_v12 = vpack.c.bf16 %v368_v36, %v368_v36 }
 0x2a5   :  { %v1180_v21 = vpop.permute.xlu2 %1179 }
 0x2a6   :  { %851 = vmatmul.bf16.vlgmr.msrb.gmra.mxu3 %v373_v20  ;;  %864 = vmatmul.bf16.vlgmr.msra.gmra.mxu0 %v374_v12  ;;  %v941_v18 = vpop.f32.mrf.mxu2 }
 0x2ae   :  { %v943_v25 = vpop.f32.mrf.mxu2  ;;  %v1150_v37 = vpop.permute.xlu2 %1149 }
 0x2af   :  { %v2460_v25 = vld [vmem:[%s3612_s17 + $0x30] sm:$0xff] }
 0x2b3   :  { %v1135_v40 = vpop.permute.xlu0 %1134 }
 0x2b4   :  { %v1170_v16 = vpop.permute.xlu1 %1169 }
 0x2b6   :  { %v3288_v32 = vpop.f32.mrf.mxu2 }
 0x2b8   :  { %v1155_v2 = vpop.permute.xlu2 %1154 }
 0x2bc   :  { %v1195_v27 = vpop.permute.xlu0 %1194 }
 0x2bd   :  { %v1130_v34 = vpop.permute.xlu1 %1129 }
 0x2c1   :  { %v1200_v26 = vpop.permute.xlu2 %1199 }
 0x2c3   :  { %v1116_v39 = vpop.f32.mrf.mxu2 }
 0x2c4   :  { %v1117_v44 = vadd.f32 %v2664_v38, %v1116_v39  ;;  %v2475_v38 = vld [vmem:[%s3612_s17 + $0xa8] sm:$0xff]  ;;  %v2468_v39 = vld [vmem:[%s3612_s17 + $0x70] sm:$0xff] }
 0x2c6   :  { %v3293_v46 = vmax.f32 %v1117_v44, 0.0  ;;  %v1220_v19 = vpop.permute.xlu0 %1219  ;;  %v2474_v44 = vld [vmem:[%s3612_s17 + $0xa0] sm:$0xff] }
 0x2c7   :  { %v1140_v41 = vpop.permute.xlu1 %1139 }
 0x2c8   :  { %v1142_v5 = vmul.f32 %v1140_v41, %v3293_v46  ;;  %v1182_v48 = vmul.f32 %v1180_v21, %v3293_v46  ;;  %v3299_v45 = vpack.c.bf16 %v3293_v46, %v3293_v46  ;;  %v1137_v49 = vmul.f32 %v1135_v40, %v3293_v46  ;;  %v2458_v40 = vld [vmem:[%s3612_s17 + $0x20] sm:$0xff]  ;;  %v2467_v41 = vld [vmem:[%s3612_s17 + $0x68] sm:$0xff] }
 0x2c9   :  { %v1177_v50 = vmul.f32 %v1175_v53, %v3293_v46  ;;  %v1132_v51 = vmul.f32 %v1130_v34, %v3293_v46  ;;  %v1172_v52 = vmul.f32 %v1170_v16, %v3293_v46  ;;  %v1157_v57 = vmul.f32 %v1155_v2, %v3293_v46  ;;  %v3327_v53 = vld [vmem:[%s3605_s10] sm:$0x3]  ;;  %v2469_v16 = vld [vmem:[%s3612_s17 + $0x78] sm:$0xff]  ;;  %v2459_v2 = vld [vmem:[%s3612_s17 + $0x28] sm:$0xff] }
 0x2ca   :  { %v2622_v54 = vpack.i.bf16 %v1142_v5, %v1182_v48  ;;  %2196 = vmatmul.msk.bf16.vlgmr.msra.gmra.mxu3 %vm324_vm3, %v3299_v45  ;;  %v1197_v58 = vmul.f32 %v1195_v27, %v3293_v46  ;;  %v1152_v60 = vmul.f32 %v1150_v37, %v3293_v46  ;;  %v1215_v62 = vpop.permute.xlu2 %1214  ;;  %v1202_v10 = vmul.f32 %v1200_v26, %v3293_v46  ;;  %v2476_v37 = vld [vmem:[%s3612_s17 + $0xb0] sm:$0xff]  ;;  %v2485_v26 = vld [vmem:[%s3612_s17 + $0xf8] sm:$0xff] }
 0x2cb   :  { %v2617_v55 = vpack.i.bf16 %v1137_v49, %v1177_v50  ;;  %v2612_v42 = vpack.i.bf16 %v1132_v51, %v1172_v52  ;;  %v1217_v17 = vmul.f32 %v1215_v62, %v3293_v46  ;;  %v908_v15 = vperm.slane %v3327_v53, 0  ;;  %1782 = vmatpush.bf16.msra.mxu2 %v2476_v37  ;;  %1768 = vmatpush.bf16.msra.mxu1 %v2469_v16  ;;  %v2457_v5 = vld [vmem:[%s3612_s17 + $0x18] sm:$0xff]  ;;  %v2466_v49 = vld [vmem:[%s3612_s17 + $0x60] sm:$0xff]  ;;  %v2484_v50 = vld [vmem:[%s3612_s17 + $0xf0] sm:$0xff] }
 0x2cc   :  { %2623 = vrot.lane.b32.xlu0 %v2622_v54, %s2711_s24  ;;  %v2632_v28 = vpack.i.bf16 %v1197_v58, %v1157_v57  ;;  %v1222_v14 = vmul.f32 %v1220_v19, %v3293_v46  ;;  %1794 = vmatpush.bf16.msrb.mxu3 %v2485_v26  ;;  %v2473_v48 = vld [vmem:[%s3612_s17 + $0x98] sm:$0xff]  ;;  %v2456_v51 = vld [vmem:[%s3612_s17 + $0x10] sm:$0xff]  ;;  %v2455_v57 = vld [vmem:[%s3612_s17 + $0x8] sm:$0xff] }
 0x2cd   :  { %2618 = vrot.lane.b32.xlu2 %v2617_v55, %s2709_s1  ;;  %2613 = vrot.lane.b32.xlu1 %v2612_v42, %s2710_s8  ;;  %v3330_v24 = vadd.f32 %v941_v18, %v908_v15  ;;  %v2461_v18 = vld [vmem:[%s3612_s17 + $0x38] sm:$0xff]  ;;  %v2472_v52 = vld [vmem:[%s3612_s17 + $0x90] sm:$0xff] }
 0x2ce   :  { %1755 = vmatpush.bf16.msrb.mxu0 %v2461_v18  ;;  %v2465_v54 = vld [vmem:[%s3612_s17 + $0x58] sm:$0xff]  ;;  %v2483_v55 = vld [vmem:[%s3612_s17 + $0xe8] sm:$0xff]  ;;  %v2470_v62 = vld [vmem:[%s3612_s17 + $0x80] sm:$0xff] }
 0x2cf   :  { %1783 = vmatpush.bf16.msra.mxu2 %v2475_v38  ;;  %1769 = vmatpush.bf16.msra.mxu1 %v2468_v39  ;;  %v2471_v58 = vld [vmem:[%s3612_s17 + $0x88] sm:$0xff]  ;;  %v2665_v15 = vld [vmem:[%s3644_s4] ss:$0 sm:$0xff]  ;;  %v1125_v16 = vpop.permute.xlu0 %1124  ;;  %v2489_v38 = vld [vmem:[%s3612_s17 + $0x118] sm:$0xff] }
 0x2d0   :  { %v1190_v59 = vpop.permute.xlu1 %1189  ;;  %1795 = vmatpush.bf16.msrb.mxu3 %v2484_v50  ;;  %v2490_v37 = vld [vmem:[%s3612_s17 + $0x120] sm:$0xff]  ;;  %v2497_v39 = vld [vmem:[%s3612_s17 + $0x158] sm:$0xff]  ;;  %v2505_v26 = vld [vmem:[%s3616_s21 + $0x8] sm:$0xff]  ;;  %v1127_v50 = vmul.f32 %v1125_v16, %v3293_v46 }
 0x2d1   :  { %v1192_v61 = vmul.f32 %v1190_v59, %v3293_v46  ;;  %v2464_v59 = vld [vmem:[%s3612_s17 + $0x50] sm:$0xff] }
 0x2d2   :  { %1756 = vmatpush.bf16.msrb.mxu0 %v2460_v25 }
 0x2d3   :  { %v2627_v6 = vpack.i.bf16 %v1192_v61, %v1152_v60  ;;  %v1235_v7 = vpop.permute.xlu2 %1234  ;;  %1784 = vmatpush.bf16.msra.mxu2 %v2474_v44  ;;  %1770 = vmatpush.bf16.msra.mxu1 %v2467_v41  ;;  %v2454_v61 = vld [vmem:[%s3612_s17] sm:$0xff]  ;;  %v2488_v44 = vld [vmem:[%s3612_s17 + $0x110] sm:$0xff] }
 0x2d4   :  { %v1237_v30 = vmul.f32 %v1235_v7, %v3293_v46  ;;  %1796 = vmatpush.bf16.msrb.mxu3 %v2483_v55  ;;  %v2462_v7 = vld [vmem:[%s3612_s17 + $0x40] sm:$0xff] }
 0x2d5   :  { %2633 = vrot.lane.b32.xlu2 %v2632_v28, %s2709_s1  ;;  %2628 = vrot.lane.b32.xlu1 %v2627_v6, %s2710_s8  ;;  %v2463_v6 = vld [vmem:[%s3612_s17 + $0x48] sm:$0xff] }
 0x2d6   :  { %v2649_v13 = vpack.i.bf16 %v1237_v30, %v1217_v17  ;;  %1757 = vmatpush.bf16.msrb.mxu0 %v2459_v2  ;;  %v2493_v30 = vld [vmem:[%s3612_s17 + $0x138] sm:$0xff] }
 0x2d7   :  { %1785 = vmatpush.bf16.msra.mxu2 %v2473_v48  ;;  %1771 = vmatpush.bf16.msra.mxu1 %v2466_v49  ;;  %v2501_v17 = vld [vmem:[%s3612_s17 + $0x178] sm:$0xff] }
 0x2d9   :  { %v1160_v1 = vpop.permute.xlu1 %1159 }
 0x2da   :  { %v1162_v3 = vmul.f32 %v1160_v1, %v3293_v46  ;;  %1758 = vmatpush.bf16.msrb.mxu0 %v2458_v40  ;;  %v2481_v1 = vld [vmem:[%s3612_s17 + $0xd8] sm:$0xff] }
 0x2db   :  { %1786 = vmatpush.bf16.msra.mxu2 %v2472_v52  ;;  %1772 = vmatpush.bf16.msra.mxu1 %v2465_v54 }
 0x2dc   :  { %v2637_v8 = vpack.i.bf16 %v1202_v10, %v1162_v3 }
 0x2dd   :  { %1224 = vperm.xlu2 %2643, %v3120_v0   ;;  %1204 = vperm.xlu1 %2642, %v3120_v0  }
 0x2de   :  { %2638 = vrot.lane.b32.xlu0 %v2637_v8, %s2711_s24  ;;  %1759 = vmatpush.bf16.msrb.mxu0 %v2457_v5 }
 0x2df   :  { %1787 = vmatpush.bf16.msra.mxu2 %v2471_v58  ;;  %1773 = vmatpush.bf16.msra.mxu1 %v2464_v59 }
 0x2e2   :  { %v1210_v29 = vpop.permute.xlu1 %1209  ;;  %1760 = vmatpush.bf16.msrb.mxu0 %v2456_v51 }
 0x2e3   :  { %v1212_v43 = vmul.f32 %v1210_v29, %v3293_v46  ;;  %1788 = vmatpush.bf16.msra.mxu2 %v2470_v62  ;;  %1774 = vmatpush.bf16.msra.mxu1 %v2463_v6 }
 0x2e5   :  { %2650 = vrot.lane.b32.xlu1 %v2649_v13, %s2709_s1 }
 0x2e6   :  { %1761 = vmatpush.bf16.msrb.mxu0 %v2455_v57 }
 0x2e7   :  { %1775 = vmatpush.bf16.msra.mxu1 %v2462_v7  ;;  %v1901_v7 = vld [vmem:[%s3618_s23 + $0x18] sm:$0xff] }
 0x2ea   :  { %1762 = vmatpush.bf16.msrb.mxu0 %v2454_v61  ;;  %v2504_v61 = vld [vmem:[%s3616_s21] sm:$0xff] }
 0x2eb   :  { %v1230_v31 = vpop.permute.xlu1 %1229  ;;  %1820 = vmatpush.bf16.msrb.mxu1 %v2501_v17 }
 0x2ec   :  { %v1232_v35 = vmul.f32 %v1230_v31, %v3293_v46  ;;  %v2479_v31 = vld [vmem:[%s3612_s17 + $0xc8] sm:$0xff] }
 0x2ed   :  { %1001 = vrot.lane.b32.xlu1 %v3330_v24, %s2709_s1 }
 0x2ee   :  { %v2644_v9 = vpack.i.bf16 %v1232_v35, %v1212_v43  ;;  %1807 = vmatpush.bf16.msra.mxu0 %v2493_v30  ;;  %v2492_v43 = vld [vmem:[%s3612_s17 + $0x130] sm:$0xff] }
 0x2ef   :  { %v2500_v35 = vld [vmem:[%s3612_s17 + $0x170] sm:$0xff] }
 0x2f0   :  { %2645 = vrot.lane.b32.xlu0 %v2644_v9, %s2710_s8  ;;  %1821 = vmatpush.bf16.msrb.mxu1 %v2500_v35 }
 0x2f2   :  { %1808 = vmatpush.bf16.msra.mxu0 %v2492_v43 }
 0x2f4   :  { %v1240_v33 = vpop.permute.xlu1 %1239 }
 0x2f5   :  { %v1242_v36 = vmul.f32 %v1240_v33, %v3293_v46 }
 0x2f7   :  { %v2654_v23 = vpack.i.bf16 %v1242_v36, %v1222_v14  ;;  %v2478_v36 = vld [vmem:[%s3612_s17 + $0xc0] sm:$0xff] }
 0x2f8   :  { %994 = vrot.lane.b32.xlu0 %v3330_v24, %s2711_s24 }
 0x2f9   :  { %2655 = vrot.lane.b32.xlu2 %v2654_v23, %s2711_s24  ;;  %v2491_v23 = vld [vmem:[%s3612_s17 + $0x128] sm:$0xff] }
 0x2fa   :  { %1809 = vmatpush.bf16.msra.mxu0 %v2491_v23 }
 0x2fe   :  { %1810 = vmatpush.bf16.msra.mxu0 %v2490_v37 }
 0x301   :  { %1008 = vrot.lane.b32.xlu2 %v3330_v24, %s2710_s8  ;;  %v813_v20 = vpop.f32.mrf.mxu0 }
 0x302   :  { %1811 = vmatpush.bf16.msra.mxu0 %v2489_v38 }
 0x306   :  { %1812 = vmatpush.bf16.msra.mxu0 %v2488_v44 }
 0x307   :  { %v800_v12 = vpop.f32.mrf.mxu3 }
 0x308   :  { %v801_v42 = vadd.f32 %v800_v12, %v2999_v11  ;;  %v2482_v11 = vld [vmem:[%s3612_s17 + $0xe0] sm:$0xff]  ;;  %v909_v12 = vperm.slane %v3327_v53, 1 }
 0x309   :  { %v815_v21 = vpop.f32.mrf.mxu0  ;;  %1797 = vmatpush.bf16.msrb.mxu3 %v2482_v11  ;;  %v2498_v53 = vld [vmem:[%s3612_s17 + $0x160] sm:$0xff]  ;;  %v2487_v11 = vld [vmem:[%s3612_s17 + $0x108] sm:$0xff] }
 0x30a   :  { %v814_v27 = vadd.f32 %v813_v20, %v801_v42  ;;  %v2499_v20 = vld [vmem:[%s3612_s17 + $0x168] sm:$0xff]  ;;  %v955_v2 = vadd.f32 %v3106_v56, %v909_v12  ;;  %v2496_v56 = vld [vmem:[%s3612_s17 + $0x150] sm:$0xff]  ;;  %1813 = vmatpush.bf16.msra.mxu0 %v2487_v11 }
 0x30b   :  { %1822 = vmatpush.bf16.msrb.mxu1 %v2499_v20 }
 0x30c   :  { %v827_v28 = vadd.f32 %v3077_v4, %v814_v27  ;;  %v2480_v4 = vld [vmem:[%s3612_s17 + $0xd0] sm:$0xff] }
 0x30d   :  { %1798 = vmatpush.bf16.msrb.mxu3 %v2481_v1 }
 0x30e   :  { %v840_v3 = vadd.f32 %v3272_v63, %v827_v28  ;;  %v1165_v63 = vpop.permute.xlu2 %1164 }
 0x30f   :  { %v802_v34 = vpop.f32.mrf.mxu3  ;;  %1823 = vmatpush.bf16.msrb.mxu1 %v2498_v53  ;;  %v1167_v51 = vmul.f32 %v1165_v63, %v3293_v46  ;;  %v1900_v63 = vld [vmem:[%s3618_s23 + $0x10] sm:$0xff] }
 0x310   :  { %v3488_v34 = vpop.permute.xlu1 %1144 }
 0x311   :  { %1799 = vmatpush.bf16.msrb.mxu3 %v2480_v4  ;;  %v2494_v4 = vld [vmem:[%s3612_s17 + $0x140] sm:$0xff]  ;;  %v1147_v35 = vmul.f32 %v3488_v34, %v3293_v46 }
 0x313   :  { %1824 = vmatpush.bf16.msrb.mxu1 %v2497_v39 }
 0x315   :  { %1800 = vmatpush.bf16.msrb.mxu3 %v2479_v31  ;;  %v1898_v31 = vld [vmem:[%s3618_s23] sm:$0xff] }
 0x316   :  { %v3476_v21 = vpop.permute.xlu2 %1184 }
 0x317   :  { %1825 = vmatpush.bf16.msrb.mxu1 %v2496_v56  ;;  %v1187_v43 = vmul.f32 %v3476_v21, %v3293_v46 }
 0x319   :  { %1801 = vmatpush.bf16.msrb.mxu3 %v2478_v36 }
 0x31d   :  { %1891 = vmatpush.bf16.msra.mxu3 %v2505_v26 }
 0x321   :  { %1892 = vmatpush.bf16.msra.mxu3 %v2504_v61 }
 0x323   :  { %v865_v60 = vpop.f32.mrf.mxu0 }
 0x327   :  { %v2619_v41 = vpop.permute.xlu2 %2618 }
 0x328   :  { %v2621_v55 = vunpack.i.h.bf16 %v2619_v41  ;;  %v2620_v42 = vunpack.i.l.bf16 %v2619_v41 }
 0x329   :  { %v852_v10 = vpop.f32.mrf.mxu3 }
 0x32a   :  { %v853_v8 = vadd.f32 %v852_v10, %v840_v3 }
 0x32b   :  { %v867_v29 = vpop.f32.mrf.mxu0 }
 0x32c   :  { %v866_v13 = vadd.f32 %v865_v60, %v853_v8  ;;  %v2495_v60 = vld [vmem:[%s3612_s17 + $0x148] sm:$0xff]  ;;  %v2486_v8 = vld [vmem:[%s3612_s17 + $0x100] sm:$0xff] }
 0x32d   :  { %1826 = vmatpush.bf16.msrb.mxu1 %v2495_v60  ;;  %1814 = vmatpush.bf16.msra.mxu0 %v2486_v8  ;;  %v1899_v29 = vld [vmem:[%s3618_s23 + $0x8] sm:$0xff] }
 0x32e   :  { %v895_v9 = vadd.f32 %v3097_v47, %v866_v13  ;;  %v1835_v47 = vld [vmem:[%s3613_s18 + $0x10] sm:$0xff] }
 0x32f   :  { %1851 = vmatpush.msrb.mxu2 %v1835_v47  ;;  %v2634_v30 = vpop.permute.xlu2 %2633 }
 0x330   :  { %v900_v19 = vadd.f32 %v2665_v15, %v895_v9  ;;  %v2636_v23 = vunpack.i.h.bf16 %v2634_v30  ;;  %v2635_v20 = vunpack.i.l.bf16 %v2634_v30 }
 0x331   :  { %v854_v33 = vpop.f32.mrf.mxu3  ;;  %1852 = vmatpush.msrb.mxu2 %v1834_v22  ;;  %1827 = vmatpush.bf16.msrb.mxu1 %v2494_v4 }
 0x332   :  { %v3456_v14 = vmax.f32 %v900_v19, 0.0 }
 0x334   :  { %v989_v18 = vmul.f32 %v3330_v24, %v3456_v14  ;;  %v1833_v24 = vld [vmem:[%s3613_s18] sm:$0xff]  ;;  %v1015_v40 = vmul.f32 %v955_v2, %v3456_v14 }
 0x335   :  { %1853 = vmatpush.msrb.mxu2 %v1833_v24 }
 0x336   :  { %v990_v25 = vsel %vm324_vm3, %v989_v18, 0.0  ;;  %v1016_v5 = vsel %vm324_vm3, %v1015_v40, 0.0 }
 0x337   :  { %991 = vadd.xlane.f32.xlu0 %v990_v25  ;;  %v1225_v12 = vpop.permute.xlu2 %1224 }
 0x338   :  { %v1227_v56 = vmul.f32 %v1225_v12, %v3293_v46 }
 0x33e   :  { %v2624_v48 = vpop.permute.xlu0 %2623 }
 0x33f   :  { %v2614_v49 = vpop.permute.xlu1 %2613  ;;  %1017 = vadd.xlane.f32.xlu0 %v1016_v5  ;;  %v2626_v27 = vunpack.i.h.bf16 %v2624_v48  ;;  %v2625_v57 = vunpack.i.l.bf16 %v2624_v48 }
 0x340   :  { %v2616_v52 = vunpack.i.h.bf16 %v2614_v49  ;;  %v2615_v54 = vunpack.i.l.bf16 %v2614_v49 }
 0x342   :  { %v1291_v58 = vsel %vm324_vm3, %v1127_v50, %v2616_v52  ;;  %v1297_v59 = vsel %vm324_vm3, %v1167_v51, %v2615_v54 }
 0x343   :  { %v1292_v62 = vsel %vm326_vm4, %v1291_v58, %v2621_v55  ;;  %v1298_v6 = vsel %vm326_vm4, %v1297_v59, %v2620_v42 }
 0x344   :  { %v1293_v28 = vsel %vm328_vm5, %v1292_v62, %v2626_v27  ;;  %v1299_v1 = vsel %vm328_vm5, %v1298_v6, %v2625_v57 }
 0x345   :  { %v1333_v3 = vpack.c.bf16 %v1293_v28, %v1293_v28  ;;  %v1335_v10 = vpack.c.bf16 %v1299_v1, %v1299_v1 }
 0x347   :  { %v2629_v17 = vpop.permute.xlu1 %2628  ;;  %1763 = vmatmul.bf16.vlgmr.msrb.gmra.mxu0 %v1333_v3  ;;  %1789 = vmatmul.bf16.vlgmr.msra.gmra.mxu2 %v1335_v10 }
 0x348   :  { %1921 = vmatpush.msra.mxu2 %v1901_v7  ;;  %v2631_v13 = vunpack.i.h.bf16 %v2629_v17  ;;  %v2630_v15 = vunpack.i.l.bf16 %v2629_v17 }
 0x34a   :  { %1922 = vmatpush.msra.mxu2 %v1900_v63  ;;  %v1300_v19 = vsel %vm324_vm3, %v1187_v43, %v2631_v13  ;;  %v1294_v33 = vsel %vm324_vm3, %v1147_v35, %v2630_v15 }
 0x34b   :  { %v1295_v25 = vsel %vm326_vm4, %v1294_v33, %v2635_v20  ;;  %v1301_v21 = vsel %vm326_vm4, %v1300_v19, %v2636_v23 }
 0x34c   :  { %1923 = vmatpush.msra.mxu2 %v1899_v29 }
 0x34d   :  { %v3547_v9 = vpop.f32.mrf.mxu3 }
 0x34e   :  { %1924 = vmatpush.msra.mxu2 %v1898_v31 }
 0x34f   :  { %v1205_v36 = vpop.permute.xlu1 %1204 }
 0x350   :  { %v2639_v47 = vpop.permute.xlu0 %2638  ;;  %v1207_v26 = vmul.f32 %v1205_v36, %v3293_v46 }
 0x351   :  { %v2641_v18 = vunpack.i.h.bf16 %v2639_v47  ;;  %v2640_v22 = vunpack.i.l.bf16 %v2639_v47 }
 0x353   :  { %v1296_v37 = vsel %vm328_vm5, %v1295_v25, %v2640_v22  ;;  %v1302_v53 = vsel %vm328_vm5, %v1301_v21, %v2641_v18  ;;  %v2656_v38 = vpop.permute.xlu2 %2655 }
 0x354   :  { %v1334_v24 = vpack.c.bf16 %v1296_v37, %v1296_v37  ;;  %v1336_v16 = vpack.c.bf16 %v1302_v53, %v1302_v53  ;;  %v2658_v51 = vunpack.i.h.bf16 %v2656_v38  ;;  %v2657_v52 = vunpack.i.l.bf16 %v2656_v38  ;;  %v2667_v37 = vld [vmem:[%s3615_s20] ss:$0 sm:$0xff]  ;;  %s2729_s20 = smov 6  }
 0x355   :  { %v1465_v34 = vpop.f32.mrf.mxu3 }
 0x356   :  { %1776 = vmatmul.bf16.vlgmr.msra.gmra.mxu1 %v1334_v24  ;;  %1802 = vmatmul.bf16.vlgmr.msrb.gmra.mxu3 %v1336_v16  ;;  %v2668_v24 = vld [vmem:[%s3617_s22] ss:$0 sm:$0xff]  ;;  %s2730_s22 = smov [#allocation3]  }
 0x357   :  { %v2651_v2 = vpop.permute.xlu1 %2650  ;;  %2389 = vmatmul.msk.f32.vlgmr.msrb.gmra.mxu2 %vm872_vm6, %v3120_v0  ;;  %s1948_s3 = sshll.u32 %s2730_s22, 4  ;;  %s1949_s3 = int_to_ptr.vmem [resolvable:$true] %s1948_s3 }
 0x358   :  { %v2653_v50 = vunpack.i.h.bf16 %v2651_v2  ;;  %v2652_v0 = vunpack.i.l.bf16 %v2651_v2 }
 0x35b   :  { %v1009_v5 = vpop.permute.xlu2 %1008 }
 0x35c   :  { %v1011_v42 = vmul.f32 %v1009_v5, %v3456_v14 }
 0x35e   :  { %v1012_v61 = vsel %vm324_vm3, %v1011_v42, 0.0 }
 0x35f   :  { %2399 = vmatmul.msk.f32.vlgmr.msra.gmra.mxu2 %vm324_vm3, %v3293_v46  ;;  %v1002_v39 = vpop.permute.xlu1 %1001 }
 0x360   :  { %v1004_v40 = vmul.f32 %v1002_v39, %v3456_v14 }
 0x362   :  { %v2646_v44 = vpop.permute.xlu0 %2645  ;;  %v1005_v41 = vsel %vm324_vm3, %v1004_v40, 0.0 }
 0x363   :  { %v2648_v48 = vunpack.i.h.bf16 %v2646_v44  ;;  %v2647_v49 = vunpack.i.l.bf16 %v2646_v44  ;;  %1006 = vadd.xlane.f32.xlu2 %v1005_v41 }
 0x365   :  { %v1327_v54 = vsel %vm324_vm3, %v1207_v26, %v2647_v49  ;;  %v1330_v55 = vsel %vm324_vm3, %v1227_v56, %v2648_v48 }
 0x366   :  { %v1328_v27 = vsel %vm326_vm4, %v1327_v54, %v2652_v0  ;;  %v1331_v57 = vsel %vm326_vm4, %v1330_v55, %v2653_v50  ;;  %2398 = vmatmul.msk.bf16.vlgmr.msra.gmra.mxu3 %vm324_vm3, %v3299_v45  ;;  %v2666_v50 = vld [vmem:[#allocation2] ss:$0 sm:$0xff] }
 0x367   :  { %v1329_v46 = vsel %vm328_vm5, %v1328_v27, %v2657_v52  ;;  %v1332_v58 = vsel %vm328_vm5, %v1331_v57, %v2658_v51 }
 0x368   :  { %v1337_v59 = vpack.c.bf16 %v1329_v46, %v1329_v46  ;;  %v1338_v11 = vpack.c.bf16 %v1332_v58, %v1332_v58 }
 0x36a   :  { %1815 = vmatmul.bf16.vlgmr.msra.gmra.mxu0 %v1337_v59  ;;  %1828 = vmatmul.bf16.vlgmr.msrb.gmra.mxu1 %v1338_v11  ;;  %v995_v60 = vpop.permute.xlu0 %994 }
 0x36b   :  { %v997_v62 = vmul.f32 %v995_v60, %v3456_v14  ;;  %1013 = vadd.xlane.f32.xlu2 %v1012_v61  ;;  %v2663_v14 = vld [vmem:[%s3607_s12] ss:$0 sm:$0xff] }
 0x36c   :  { %v987_v35 = vadd.f32 %v2663_v14, %v3288_v32 }
 0x36d   :  { %v998_v6 = vsel %vm324_vm3, %v997_v62, 0.0 }
 0x36e   :  { %999 = vadd.xlane.f32.xlu1 %v998_v6 }
 0x3aa   :  { %v992_v4 = vpop.xlane.xlu0 %991 }
 0x3b2   :  { %v1018_v19 = vpop.xlane.xlu0 %1017 }
 0x3c4   :  { %v1764_v28 = vpop.f32.mrf.mxu0 }
 0x3c5   :  { %v1765_v17 = vadd.f32 %v1764_v28, %v3547_v9 }
 0x3ca   :  { %v1790_v1 = vpop.f32.mrf.mxu2 }
 0x3cc   :  { %v1766_v45 = vpop.f32.mrf.mxu0 }
 0x3d2   :  { %v1792_v3 = vpop.f32.mrf.mxu2 }
 0x3d3   :  { %v1777_v10 = vpop.f32.mrf.mxu1 }
 0x3d4   :  { %v1778_v63 = vadd.f32 %v1777_v10, %v1765_v17 }
 0x3d6   :  { %v1007_v7 = vpop.xlane.xlu2 %1006  ;;  %v1791_v33 = vadd.f32 %v1790_v1, %v1778_v63 }
 0x3d9   :  { %v1803_v8 = vpop.f32.mrf.mxu3 }
 0x3da   :  { %v1804_v23 = vadd.f32 %v1803_v8, %v1791_v33  ;;  %v1855_v32 = vpop.f32.mrf.mxu2 }
 0x3db   :  { %v1779_v30 = vpop.f32.mrf.mxu1 }
 0x3de   :  { %v1014_v31 = vpop.xlane.xlu2 %1013 }
 0x3e1   :  { %v1805_v29 = vpop.f32.mrf.mxu3  ;;  %v1000_v13 = vpop.xlane.xlu1 %999 }
 0x3e2   :  { %v1020_v15 = vsel %vm1019_vm7, %v992_v4, %v1000_v13  ;;  %v1926_v0 = vpop.f32.mrf.mxu2 }
 0x3e3   :  { %v1022_v43 = vsel %vm1021_vm8, %v1020_v15, %v1007_v7  ;;  %v1927_v52 = vadd.f32 %v2666_v50, %v1926_v0 }
 0x3e4   :  { %v1024_v36 = vsel %vm1023_vm9, %v1022_v43, %v1014_v31 }
 0x3e5   :  { %v1026_v9 = vsel %vm1025_vm10, %v1024_v36, %v1018_v19 }
 0x3e6   :  { %v1027_v20 = vadd.f32 %v1026_v9, %v987_v35 }
 0x3e7   :  { %v1816_v47 = vpop.f32.mrf.mxu0  ;;  %v1829_v12 = vpop.f32.mrf.mxu1 }
 0x3e8   :  { %v1817_v18 = vadd.f32 %v1816_v47, %v1804_v23  ;;  %v1029_v22 = vsel %vm1028_vm11, %v1027_v20, -inf }
 0x3e9   :  { %v1894_v25 = vpop.f32.mrf.mxu3  ;;  %1030 = vmax.xlane.f32.xlu1 %v1029_v22 }
 0x3ea   :  { %v1830_v21 = vadd.f32 %v1829_v12, %v1817_v18  ;;  %v1895_v38 = vadd.f32 %v2668_v24, %v1894_v25 }
 0x3ec   :  { %v1858_v53 = vadd.f32 %v1855_v32, %v1830_v21 }
 0x3ee   :  { %v1863_v16 = vadd.f32 %v2667_v37, %v1858_v53 }
 0x3ef   :  { %v1818_v34 = vpop.f32.mrf.mxu0  ;;  %v1831_v2 = vpop.f32.mrf.mxu1 }
 0x3f0   :  { %v1864_v39 = vmax.f32 %v1863_v16, 0.0 }
 0x3f1   :  { %v1896_v40 = vpop.f32.mrf.mxu3 }
 0x3f2   :  { %v1929_v44 = vmul.f32 %v1895_v38, %v1864_v39 }
 0x3f4   :  { %v1930_v41 = vsel %vm324_vm3, %v1929_v44, 0.0 }
 0x3f5   :  { %1931 = vadd.xlane.f32.xlu0 %v1930_v41 }
 0x45c   :  { %v1031_v56 = vpop.xlane.xlu1 %1030 }
 0x45d   :  { %v1032_v26 = vsub.f32 %v1027_v20, %v1031_v56 }
 0x45f   :  { %v1033_v5 = vmul.f32 1.442695, %v1032_v26 }
 0x461   :  { %2669 = vpow2.f32 %v1033_v5 }
 0x467   :  { %v2670_v48 = vpop.eup %2669 }
 0x468   :  { %v1035_v49 = vsel %vm1028_vm11, %v2670_v48, 0.0  ;;  %v1932_v51 = vpop.xlane.xlu0 %1931 }
 0x469   :  { %1036 = vadd.xlane.f32.xlu2 %v1035_v49  ;;  %v1933_v54 = vadd.f32 %v1932_v51, %v1927_v52 }
 0x481   :  { %1935 = vrot.lane.b32.xlu2 %v1933_v54, %s2729_s20 }
 0x4dc   :  { %v1037_v55 = vpop.xlane.xlu2 %1036 }
 0x4dd   :  { %2671 = vlog2.f32 %v1037_v55  ;;  %v1057_v6 = vand.u32 2147483648, %v1037_v55  ;;  %vm1051_vm13 = vweird.f32 %v1037_v55  ;;  %v1055_v28 = vand.u32 2147483647, %v1037_v55 }
 0x4de   :  { %2673 = vrcp.f32 %v1037_v55 }
 0x4df   :  { %v1058_v45 = vor.u32 1.1754944e-38, %v1057_v6  ;;  %vm1056_vm15 = vcmp.eq.f32.partialorder %v1055_v28, 8.507059e+37 }
 0x4e3   :  { %v2672_v42 = vpop.eup %2671 }
 0x4e4   :  { %v1039_v27 = vmul.f32 0.6931472, %v2672_v42  ;;  %v2674_v59 = vpop.eup %2673  ;;  %v1936_v4 = vpop.permute.xlu2 %1935 }
 0x4e5   :  { %v1047_v11 = vmul.f32 %v2674_v59, %v1037_v55  ;;  %vm1052_vm12 = vweird.f32 %v2674_v59 }
 0x4e6   :  { %v1040_v57 = vsub.f32 %v1032_v26, %v1039_v27  ;;  %vm1053_vm14 = vmor %vm1051_vm13, %vm1052_vm12 }
 0x4e7   :  { %v1048_v60 = vsub.f32 1.0, %v1047_v11 }
 0x4e8   :  { %v1041_v46 = vmul.f32 %v2670_v48, %v1040_v57 }
 0x4e9   :  { %v1049_v61 = vmul.f32 %v2674_v59, %v1048_v60 }
 0x4ea   :  { %v1042_v58 = vsel %vm1028_vm11, %v1041_v46, 0.0 }
 0x4eb   :  { %1043 = vadd.xlane.f32.xlu1 %v1042_v58  ;;  %v1050_v62 = vadd.f32 %v2674_v59, %v1049_v61 }
 0x4ed   :  { %v1054_v1 = vsel %vm1053_vm14, %v2674_v59, %v1050_v62 }
 0x4ee   :  { %v1059_v7 = vsel %vm1056_vm15, %v1058_v45, %v1054_v1 }
 0x55e   :  { %v1044_v3 = vpop.xlane.xlu1 %1043 }
 0x55f   :  { %v1045_v10 = vsub.f32 0.0, %v1044_v3 }
 0x561   :  { %v1060_v8 = vmul.f32 %v1059_v7, %v1045_v10 }
 0x563   :  { %v1938_v30 = vsel %vm1028_vm11, %v1040_v57, %v1060_v8 }
 0x564   :  { %v1939_v17 = vsel %vm90_vm1, %v1938_v30, %v1936_v4 }
 0x565   :  { %v1941_v14 = vsel %vm1940_vm0, %v1939_v17, 0.0 }
 0x566   :  { %1942 = vst [vmem:[#allocation3] sm:$0xff] %v1941_v14 }
 0x567   :  { %1953 = dma.vmem_to_hbm [thread:$0]  %s1949_s3, 128, %s1951_s9, [#allocation4]  }
 0x568   :  { %2699 = dma.done.wait [#allocation4], 128  }
 0x569   :  { %2700 = vsyncadd [#allocation4], 4294967168 }
 0x56a   :  { %1958 = vsyncpa [#allocation4], 1 }

</bundles_post_ra>
